<compile_context>
chip_gen: v5e
topology: v5e:2x2
jax: 0.10.0
libtpu: 0.0.40
codegen_flags: <defaults>
</compile_context>

<pallas_src>
import jax
import jax.numpy as jnp
from jax.experimental import pallas as pl
from jax.experimental.pallas import tpu as pltpu

H1 = 512          # hidden sizes fixed by the PyTorch module
H2 = 256
_LANE = 128
# Packed layout of the small f32 operands; every section start is 128-aligned:
#   [0:512)=b1   [512:768)=b2   [768:1024)=w3 row   [1024]=b3   (rest zero pad)
TAIL_W = H1 + 2 * H2 + _LANE   # 1152

_HAS_BUFFERED = hasattr(pl, "Buffered")


def _round_up(x, m):
    return ((x + m - 1) // m) * m


def _round_down(x, m):
    return (x // m) * m


def mlp_disc_kernel(x_ref, w1_ref, w2_ref, tail_ref, o_ref):
    # x: (tile_b, D) f32 -> cast to bf16 here (avoids a standalone HBM cast pass).
    x = x_ref[...].astype(jnp.bfloat16)

    b1 = tail_ref[:, 0:H1]                                # (1, 512) f32
    b2 = tail_ref[:, H1:H1 + H2]                          # (1, 256)
    w3 = tail_ref[:, H1 + H2:H1 + 2 * H2]                 # (1, 256)
    b3 = tail_ref[:, H1 + 2 * H2:H1 + 2 * H2 + 1]         # (1, 1)

    # Linear(D, 512) + LeakyReLU(0.2): bf16 MXU, f32 accumulation.
    h1 = jnp.dot(x, w1_ref[...], preferred_element_type=jnp.float32) + b1
    h1 = jnp.maximum(h1, 0.2 * h1).astype(jnp.bfloat16)

    # Linear(512, 256) + LeakyReLU(0.2)
    h2 = jnp.dot(h1, w2_ref[...], preferred_element_type=jnp.float32) + b2
    h2 = jnp.maximum(h2, 0.2 * h2)

    # Linear(256, 1): N=1 -> VPU multiply + lane reduction (no degenerate MXU op).
    logit = jnp.sum(h2 * w3, axis=-1, keepdims=True) + b3

    # Exact f32 sigmoid (negligible cost; keeps parity with the torch reference).
    o_ref[...] = (1.0 / (1.0 + jnp.exp(-logit))).astype(o_ref.dtype)


def _resident_spec(shape):
    """Grid-invariant operand: constant index_map keeps it VMEM-resident; single buffer."""
    idx = lambda i, n=len(shape): (0,) * n
    if _HAS_BUFFERED:
        return pl.BlockSpec(shape, idx, pipeline_mode=pl.Buffered(1))
    return pl.BlockSpec(shape, idx)


def prepare_params(params):
    """One-time cast/pack of the weights (do NOT call per training step)."""
    w1, b1, w2, b2, w3, b3 = params
    D = w1.shape[0]
    assert w1.shape == (D, H1) and w2.shape == (H1, H2)
    w1b = w1.astype(jnp.bfloat16)
    w2b = w2.astype(jnp.bfloat16)
    tail = jnp.zeros((1, TAIL_W), jnp.float32)
    tail = tail.at[:, 0:H1].set(b1.reshape(1, H1).astype(jnp.float32))
    tail = tail.at[:, H1:H1 + H2].set(b2.reshape(1, H2).astype(jnp.float32))
    tail = tail.at[:, H1 + H2:H1 + 2 * H2].set(w3.reshape(1, H2).astype(jnp.float32))
    tail = tail.at[:, H1 + 2 * H2:H1 + 2 * H2 + 1].set(b3.reshape(1, 1).astype(jnp.float32))
    return w1b, w2b, tail


def discriminator_mlp_standard(img, prepared, *, tile_b=None, vmem_budget_bytes=28 << 20):
    """img: (B, C, H, W) float32 -> (B, 1) float32 validity scores."""
    w1b, w2b, tail = prepared
    B = img.shape[0]
    D = w1b.shape[0]

    # Row-major flatten == img.view(B, -1); kept f32 (cast to bf16 happens in-kernel).
    x = img.reshape(B, -1).astype(jnp.float32)   # astype is a no-op for f32 inputs
    assert x.shape[1] == D

    # ---- VMEM-aware batch-tile sizing (v7x: 64 MiB physical, 32 MiB scoped default) ----
    resident_bytes = w1b.size * 2 + w2b.size * 2 + tail.size * 4
    # per-row VMEM: double-buffered f32 x tile + in-kernel bf16 x copy + h1(f32+bf16)
    # + h2 f32 + h2*w3 temp + logit/out (double-buffered).
    per_row_bytes = 2 * D * 4 + D * 2 + H1 * 6 + H2 * 8 + 16
    if tile_b is None:
        avail = vmem_budget_bytes - resident_bytes - (2 << 20)   # slack for compiler temps
        tile_b = max(8, min(1024, _round_down(max(avail, per_row_bytes) // per_row_bytes, 8)))
    tile_b = int(tile_b)
    if tile_b >= B:
        tile_b = B                                  # one full-batch block (always layout-legal)
    else:
        tile_b = max(8, _round_down(tile_b, 8))     # interior blocks need sublane alignment

    grid = (pl.cdiv(B, tile_b),)                    # no jnp.pad: partial last block, masked store

    vmem_need = resident_bytes + tile_b * per_row_bytes
    vmem_limit = int(min(max(int(1.25 * vmem_need), 8 << 20), 40 << 20))
    vmem_limit = max(vmem_limit, vmem_need + (1 << 20))

    flops = 2 * B * (D * H1 + H1 * H2 + H2)
    bytes_accessed = x.size * 4 + w1b.size * 2 + w2b.size * 2 + tail.size * 4 + B * 4

    out = pl.pallas_call(
        mlp_disc_kernel,
        out_shape=jax.ShapeDtypeStruct((B, 1), jnp.float32),
        grid=grid,
        in_specs=[
            pl.BlockSpec((tile_b, D), lambda i: (i, 0)),   # x: tiled over batch, auto double-buffered
            _resident_spec((D, H1)),                       # w1 (bf16, VMEM-resident, single buffer)
            _resident_spec((H1, H2)),                      # w2
            _resident_spec((1, TAIL_W)),                   # packed b1/b2/w3/b3
        ],
        out_specs=pl.BlockSpec((tile_b, 1), lambda i: (i, 0)),
        compiler_params=pltpu.CompilerParams(
            dimension_semantics=("parallel",),
            vmem_limit_bytes=vmem_limit,
        ),
        cost_estimate=pl.CostEstimate(
            flops=flops, transcendentals=B, bytes_accessed=bytes_accessed),
    )(x, w1b, w2b, tail)
    return out


def init_params(key, in_features):
    """Deterministic init mimicking torch.nn.Linear default U[-1/sqrt(fan_in), 1/sqrt(fan_in)]."""
    dims = [(in_features, H1), (H1, H2), (H2, 1)]
    params = []
    for (fan_in, fan_out) in dims:
        key, kw, kb = jax.random.split(key, 3)
        bound = 1.0 / jnp.sqrt(fan_in)
        w = jax.random.uniform(kw, (fan_in, fan_out), jnp.float32, -bound, bound)
        b = jax.random.uniform(kb, (1, fan_out), jnp.float32, -bound, bound)
        params += [w, b]
    return tuple(params)


def reference_forward(img, params):
    """Pure-JAX f32 reference for the same forward pass (for sanity checking)."""
    w1, b1, w2, b2, w3, b3 = params
    x = img.reshape(img.shape[0], -1).astype(jnp.float32)
    h = x @ w1 + b1
    h = jnp.where(h > 0, h, 0.2 * h)
    h = h @ w2 + b2
    h = jnp.where(h > 0, h, 0.2 * h)
    h = h @ w3 + b3
    return jax.nn.sigmoid(h)


if __name__ == "__main__":
    key = jax.random.PRNGKey(0)
    k_img, k_params = jax.random.split(key)

    # Small image consistent with the module: img_shape = (4, 16, 16) -> D = 1024
    B, C, H, W = 2, 4, 16, 16
    img = jax.random.normal(k_img, (B, C, H, W), jnp.float32)
    params = init_params(k_params, C * H * W)
    prepared = prepare_params(params)          # one-time weight cast/pack

    out = discriminator_mlp_standard(img, prepared)
    out = jax.block_until_ready(out)

    ref = reference_forward(img, params)
    assert out.shape == (B, 1), out.shape
    # bf16 weights/activations deviate slightly from the f32 reference (intentional).
    assert jnp.allclose(out, ref, atol=2e-2, rtol=0.0), (out, ref)

    print("KERNEL_OK")
</pallas_src>

<mosaic_0001>
module attributes {stable_mosaic.version = 11 : i64} {
  func.func @mlp_disc_kernel(%arg0: i32, %arg1: memref<2x1024xf32, #tpu.memory_space<vmem>>, %arg2: memref<1024x512xbf16, #tpu.memory_space<vmem>>, %arg3: memref<512x256xbf16, #tpu.memory_space<vmem>>, %arg4: memref<1x1152xf32, #tpu.memory_space<vmem>>, %arg5: memref<2x1xf32, #tpu.memory_space<vmem>>) attributes {dimension_semantics = [#tpu.dimension_semantics<parallel>], iteration_bounds = array<i64: 1>, scalar_prefetch = 0 : i64, scratch_operands = 0 : i64, tpu.core_type = #tpu.core_type<tc>, window_params = [{transform_indices = @transform_0, window_bounds = array<i64: 2, 1024>}, {pipeline_mode = #tpu.pipeline_mode<synchronous>, transform_indices = @transform_1, window_bounds = array<i64: 1024, 512>}, {pipeline_mode = #tpu.pipeline_mode<synchronous>, transform_indices = @transform_2, window_bounds = array<i64: 512, 256>}, {pipeline_mode = #tpu.pipeline_mode<synchronous>, transform_indices = @transform_3, window_bounds = array<i64: 1, 1152>}, {transform_indices = @transform_4, window_bounds = array<i64: 2, 1>}]} {
    %c0 = arith.constant 0 : index
    %c0_0 = arith.constant 0 : index
    %0 = vector.load %arg1[%c0, %c0_0] : memref<2x1024xf32, #tpu.memory_space<vmem>>, vector<2x1024xf32>
    %1 = arith.truncf %0 : vector<2x1024xf32> to vector<2x1024xbf16>
    %c0_1 = arith.constant 0 : index
    %c0_2 = arith.constant 0 : index
    %2 = vector.load %arg4[%c0_1, %c0_2] : memref<1x1152xf32, #tpu.memory_space<vmem>>, vector<1x512xf32>
    %c0_3 = arith.constant 0 : index
    %c512 = arith.constant 512 : index
    %3 = vector.load %arg4[%c0_3, %c512] : memref<1x1152xf32, #tpu.memory_space<vmem>>, vector<1x256xf32>
    %c0_4 = arith.constant 0 : index
    %c768 = arith.constant 768 : index
    %4 = vector.load %arg4[%c0_4, %c768] : memref<1x1152xf32, #tpu.memory_space<vmem>>, vector<1x256xf32>
    %c0_5 = arith.constant 0 : index
    %c1024 = arith.constant 1024 : index
    %5 = vector.load %arg4[%c0_5, %c1024] : memref<1x1152xf32, #tpu.memory_space<vmem>>, vector<1x1xf32>
    %c0_6 = arith.constant 0 : index
    %c0_7 = arith.constant 0 : index
    %6 = vector.load %arg2[%c0_6, %c0_7] : memref<1024x512xbf16, #tpu.memory_space<vmem>>, vector<1024x512xbf16>
    %cst = arith.constant dense<0.000000e+00> : vector<2x512xf32>
    %7 = tpu.matmul %1, %6, %cst {dimension_numbers = #tpu.dot_dimension_numbers<[1], [0], [0], [1], [0, 0, 1, 1], [], []>} : vector<2x1024xbf16>, vector<1024x512xbf16>, vector<2x512xf32> -> vector<2x512xf32>
    %8 = vector.broadcast %2 : vector<1x512xf32> to vector<2x512xf32>
    %9 = arith.addf %7, %8 : vector<2x512xf32>
    %cst_8 = arith.constant 2.000000e-01 : f32
    %10 = vector.broadcast %cst_8 : f32 to vector<2x512xf32>
    %11 = arith.mulf %10, %9 : vector<2x512xf32>
    %12 = arith.maximumf %9, %11 : vector<2x512xf32>
    %13 = arith.truncf %12 : vector<2x512xf32> to vector<2x512xbf16>
    %c0_9 = arith.constant 0 : index
    %c0_10 = arith.constant 0 : index
    %14 = vector.load %arg3[%c0_9, %c0_10] : memref<512x256xbf16, #tpu.memory_space<vmem>>, vector<512x256xbf16>
    %cst_11 = arith.constant dense<0.000000e+00> : vector<2x256xf32>
    %15 = tpu.matmul %13, %14, %cst_11 {dimension_numbers = #tpu.dot_dimension_numbers<[1], [0], [0], [1], [0, 0, 1, 1], [], []>} : vector<2x512xbf16>, vector<512x256xbf16>, vector<2x256xf32> -> vector<2x256xf32>
    %16 = vector.broadcast %3 : vector<1x256xf32> to vector<2x256xf32>
    %17 = arith.addf %15, %16 : vector<2x256xf32>
    %cst_12 = arith.constant 2.000000e-01 : f32
    %18 = vector.broadcast %cst_12 : f32 to vector<2x256xf32>
    %19 = arith.mulf %18, %17 : vector<2x256xf32>
    %20 = arith.maximumf %17, %19 : vector<2x256xf32>
    %21 = vector.broadcast %4 : vector<1x256xf32> to vector<2x256xf32>
    %22 = arith.mulf %20, %21 : vector<2x256xf32>
    %cst_13 = arith.constant dense<0.000000e+00> : vector<2xf32>
    %23 = vector.multi_reduction <add>, %22, %cst_13 [1] : vector<2x256xf32> to vector<2xf32>
    %24 = vector.shape_cast %23 : vector<2xf32> to vector<2x1xf32>
    %25 = vector.broadcast %5 : vector<1x1xf32> to vector<2x1xf32>
    %26 = arith.addf %24, %25 : vector<2x1xf32>
    %cst_14 = arith.constant 0.000000e+00 : f32
    %27 = vector.broadcast %cst_14 : f32 to vector<2x1xf32>
    %28 = arith.subf %27, %26 : vector<2x1xf32>
    %29 = math.exp %28 : vector<2x1xf32>
    %cst_15 = arith.constant 1.000000e+00 : f32
    %30 = vector.broadcast %cst_15 : f32 to vector<2x1xf32>
    %31 = arith.addf %30, %29 : vector<2x1xf32>
    %cst_16 = arith.constant 1.000000e+00 : f32
    %32 = vector.broadcast %cst_16 : f32 to vector<2x1xf32>
    %33 = arith.divf %32, %31 : vector<2x1xf32>
    %c0_17 = arith.constant 0 : index
    %c0_18 = arith.constant 0 : index
    %34 = vector.load %arg5[%c0_17, %c0_18] : memref<2x1xf32, #tpu.memory_space<vmem>>, vector<2x1xf32>
    tpu.vector_store %arg5[%c0_17, %c0_18], %33 {strides = array<i32>} : memref<2x1xf32, #tpu.memory_space<vmem>>, vector<2x1xf32>,
    return
  }
  func.func @transform_0(%arg0: i32) -> (i32, i32) {
    %c0_i32 = arith.constant 0 : i32
    %c0_i32_0 = arith.constant 0 : i32
    return %arg0, %c0_i32 : i32, i32
  }
  func.func @transform_1(%arg0: i32) -> (i32, i32) {
    %c0_i32 = arith.constant 0 : i32
    %c0_i32_0 = arith.constant 0 : i32
    %c0_i32_1 = arith.constant 0 : i32
    return %c0_i32, %c0_i32_0 : i32, i32
  }
  func.func @transform_2(%arg0: i32) -> (i32, i32) {
    %c0_i32 = arith.constant 0 : i32
    %c0_i32_0 = arith.constant 0 : i32
    %c0_i32_1 = arith.constant 0 : i32
    return %c0_i32, %c0_i32_0 : i32, i32
  }
  func.func @transform_3(%arg0: i32) -> (i32, i32) {
    %c0_i32 = arith.constant 0 : i32
    %c0_i32_0 = arith.constant 0 : i32
    %c0_i32_1 = arith.constant 0 : i32
    return %c0_i32, %c0_i32_0 : i32, i32
  }
  func.func @transform_4(%arg0: i32) -> (i32, i32) {
    %c0_i32 = arith.constant 0 : i32
    %c0_i32_0 = arith.constant 0 : i32
    return %arg0, %c0_i32 : i32, i32
  }
}

</mosaic_0001>

<bundles_post_ra>
// kernel: tpu_custom_call.1
= control target key start
LH: loop header
LB: loop body
LE: loop exit
PB: predicated region body
PF: predicated region fallthrough
CT: control target
= control target key end

     0   :  { %9 = vsyncpa [#allocation3], 0  ;;  %s4470_s0 = inlined_call_operand.hbm [shape: f32[2,1024], index: 0, kind: input, shape index: {}]   ;;  %s4471_s1 = inlined_call_operand.hbm [shape: bf16[1024,512], index: 1, kind: input, shape index: {}]   ;;  %s4472_s2 = inlined_call_operand.hbm [shape: bf16[512,256], index: 2, kind: input, shape index: {}]   ;;  %s4473_s3 = inlined_call_operand.hbm [shape: f32[1,1152], index: 3, kind: input, shape index: {}]   ;;  %s4474_s4 = inlined_call_operand.vmem [shape: f32[2,1], index: 4, kind: output, shape index: {}]  }
   0x1   :  { %10 = vsyncpa [#allocation5], 0  ;;  %s27_s17 = sshll.u32 %s4471_s1, 4  ;;  %s28_s17 = int_to_ptr.hbm [resolvable:$true] %s27_s17 }
   0x2   :  { %11 = vsyncpa [#allocation8], 0  ;;  %s4342_s18 = smov [#allocation4]   ;;  %s17_s22 = sshll.u32 %s4470_s0, 4  ;;  %s18_s22 = int_to_ptr.hbm [resolvable:$true] %s17_s22 }
   0x3   :  { %s29_s19 = sshll.u32 %s4342_s18, 4  ;;  %s4343_s23 = smov 256   ;;  %s30_s19 = int_to_ptr.vmem [resolvable:$true] %s29_s19 }
   0x4   :  { %s4344_s24 = smov 16   ;;  %s4345_s25 = smov [#allocation2]  }
   0x5   :  { %35 = dma.hbm_to_vmem [thread:$0]  %s28_s17, 32768, %s30_s19, [#allocation5], %s4343_s23, %s4343_s23, %s4344_s24  }
   0x6   :  { %s19_s26 = sshll.u32 %s4345_s25, 4  ;;  %s40_s29 = sshll.u32 %s4472_s2, 4  ;;  %s20_s26 = int_to_ptr.vmem [resolvable:$true] %s19_s26  ;;  %s41_s29 = int_to_ptr.hbm [resolvable:$true] %s40_s29 }
   0x7   :  { %22 = dma.hbm_to_vmem [thread:$0]  %s18_s22, 256, %s20_s26, [#allocation3]  }
   0x8   :  { %s4346_s1 = smov [#allocation6]   ;;  %s54_s0 = sshll.u32 %s4473_s3, 4  ;;  %s55_s0 = int_to_ptr.hbm [resolvable:$true] %s54_s0 }
   0x9   :  { %s42_s30 = sshll.u32 %s4346_s1, 4  ;;  %s4347_s7 = smov 128   ;;  %s43_s30 = int_to_ptr.vmem [resolvable:$true] %s42_s30 }
   0xa   :  { %s4348_s8 = smov 8   ;;  %s4349_s9 = smov [#allocation7]  }
   0xb   :  { %48 = dma.hbm_to_vmem [thread:$0]  %s41_s29, 8192, %s43_s30, [#allocation5], %s4347_s7, %s4347_s7, %s4348_s8  }
   0xc   :  { %s56_s10 = sshll.u32 %s4349_s9, 4  ;;  %s57_s10 = int_to_ptr.vmem [resolvable:$true] %s56_s10 }
   0xd   :  { %59 = dma.hbm_to_vmem [thread:$0]  %s55_s0, 144, %s57_s10, [#allocation8]  }
   0xe   :  { %4336 = dma.done.wait [#allocation3], 256  }
   0xf   :  { %4337 = vsyncadd [#allocation3], 4294967040 }
  0x10   :  { %4338 = dma.done.wait [#allocation5], 40960  }
  0x11   :  { %4339 = vsyncadd [#allocation5], 4294926336 }
  0x12   :  { %4340 = dma.done.wait [#allocation8], 144  }
  0x13   :  { %4341 = vsyncadd [#allocation8], 4294967152  ;;  %v2740_v0 = vld [vmem:[#allocation4 + $0xe0] sm:$0xf]  ;;  %v3936_v1 = vld [vmem:[#allocation4 + $0xec] sm:$0xf0] }
  0x14   :  { %v2868_v2 = vld [vmem:[#allocation4 + $0x1e0] sm:$0xf]  ;;  %v2741_v3 = vor.u32 %v3936_v1, %v2740_v0  ;;  %v3968_v4 = vld [vmem:[#allocation4 + $0x1ec] sm:$0xf0]  ;;  %vm2588_vm0 = vcmask 1041408   ;;  %vm2617_vm4 = vcmask 1024  }
  0x15   :  { %v2996_v5 = vld [vmem:[#allocation4 + $0x2e0] sm:$0xf]  ;;  %v4000_v6 = vld [vmem:[#allocation4 + $0x2ec] sm:$0xf0]  ;;  %v2869_v7 = vor.u32 %v3968_v4, %v2868_v2 }
  0x16   :  { %v2997_v8 = vor.u32 %v4000_v6, %v2996_v5  ;;  %v3124_v9 = vld [vmem:[#allocation4 + $0x3e0] sm:$0xf]  ;;  %v4032_v10 = vld [vmem:[#allocation4 + $0x3ec] sm:$0xf0]  ;;  %1656 = vmatpush.bf16.msra.mxu0 %v2741_v3 }
  0x17   :  { %v2724_v11 = vld [vmem:[#allocation4 + $0xc0] sm:$0xf]  ;;  %v3125_v12 = vor.u32 %v4032_v10, %v3124_v9  ;;  %v3932_v13 = vld [vmem:[#allocation4 + $0xcc] sm:$0xf0]  ;;  %1669 = vmatpush.bf16.msra.mxu1 %v2869_v7 }
  0x18   :  { %v2852_v14 = vld [vmem:[#allocation4 + $0x1c0] sm:$0xf]  ;;  %v3964_v15 = vld [vmem:[#allocation4 + $0x1cc] sm:$0xf0]  ;;  %1682 = vmatpush.bf16.msra.mxu2 %v2997_v8  ;;  %v2725_v16 = vor.u32 %v3932_v13, %v2724_v11 }
  0x19   :  { %v2853_v17 = vor.u32 %v3964_v15, %v2852_v14  ;;  %v2980_v18 = vld [vmem:[#allocation4 + $0x2c0] sm:$0xf]  ;;  %v3996_v19 = vld [vmem:[#allocation4 + $0x2cc] sm:$0xf0]  ;;  %1695 = vmatpush.bf16.msra.mxu3 %v3125_v12 }
  0x1a   :  { %v3108_v20 = vld [vmem:[#allocation4 + $0x3c0] sm:$0xf]  ;;  %v2981_v21 = vor.u32 %v3996_v19, %v2980_v18  ;;  %v4028_v22 = vld [vmem:[#allocation4 + $0x3cc] sm:$0xf0]  ;;  %1657 = vmatpush.bf16.msra.mxu0 %v2725_v16 }
  0x1b   :  { %v2708_v23 = vld [vmem:[#allocation4 + $0xa0] sm:$0xf]  ;;  %v3928_v24 = vld [vmem:[#allocation4 + $0xac] sm:$0xf0]  ;;  %v3109_v25 = vor.u32 %v4028_v22, %v3108_v20  ;;  %1670 = vmatpush.bf16.msra.mxu1 %v2853_v17 }
  0x1c   :  { %v2836_v26 = vld [vmem:[#allocation4 + $0x1a0] sm:$0xf]  ;;  %v3960_v27 = vld [vmem:[#allocation4 + $0x1ac] sm:$0xf0]  ;;  %v2709_v29 = vor.u32 %v3928_v24, %v2708_v23  ;;  %1683 = vmatpush.bf16.msra.mxu2 %v2981_v21 }
  0x1d   :  { %v2964_v28 = vld [vmem:[#allocation4 + $0x2a0] sm:$0xf]  ;;  %v3992_v30 = vld [vmem:[#allocation4 + $0x2ac] sm:$0xf0]  ;;  %v2837_v33 = vor.u32 %v3960_v27, %v2836_v26  ;;  %1696 = vmatpush.bf16.msra.mxu3 %v3109_v25 }
  0x1e   :  { %v3092_v31 = vld [vmem:[#allocation4 + $0x3a0] sm:$0xf]  ;;  %v4024_v32 = vld [vmem:[#allocation4 + $0x3ac] sm:$0xf0]  ;;  %v2965_v34 = vor.u32 %v3992_v30, %v2964_v28  ;;  %1658 = vmatpush.bf16.msra.mxu0 %v2709_v29 }
  0x1f   :  { %v2692_v35 = vld [vmem:[#allocation4 + $0x80] sm:$0xf]  ;;  %v3924_v36 = vld [vmem:[#allocation4 + $0x8c] sm:$0xf0]  ;;  %v3093_v38 = vor.u32 %v4024_v32, %v3092_v31  ;;  %1671 = vmatpush.bf16.msra.mxu1 %v2837_v33 }
  0x20   :  { %v2820_v37 = vld [vmem:[#allocation4 + $0x180] sm:$0xf]  ;;  %v3956_v39 = vld [vmem:[#allocation4 + $0x18c] sm:$0xf0]  ;;  %v2693_v44 = vor.u32 %v3924_v36, %v2692_v35  ;;  %1684 = vmatpush.bf16.msra.mxu2 %v2965_v34 }
  0x21   :  { %v2948_v40 = vld [vmem:[#allocation4 + $0x280] sm:$0xf]  ;;  %v3988_v41 = vld [vmem:[#allocation4 + $0x28c] sm:$0xf0]  ;;  %v2821_v45 = vor.u32 %v3956_v39, %v2820_v37  ;;  %1697 = vmatpush.bf16.msra.mxu3 %v3093_v38 }
  0x22   :  { %v3076_v42 = vld [vmem:[#allocation4 + $0x380] sm:$0xf]  ;;  %v4020_v43 = vld [vmem:[#allocation4 + $0x38c] sm:$0xf0]  ;;  %v2949_v46 = vor.u32 %v3988_v41, %v2948_v40  ;;  %1659 = vmatpush.bf16.msra.mxu0 %v2693_v44 }
  0x23   :  { %v2676_v47 = vld [vmem:[#allocation4 + $0x60] sm:$0xf]  ;;  %v3920_v48 = vld [vmem:[#allocation4 + $0x6c] sm:$0xf0]  ;;  %v3077_v50 = vor.u32 %v4020_v43, %v3076_v42  ;;  %1672 = vmatpush.bf16.msra.mxu1 %v2821_v45 }
  0x24   :  { %v2804_v49 = vld [vmem:[#allocation4 + $0x160] sm:$0xf]  ;;  %v3952_v51 = vld [vmem:[#allocation4 + $0x16c] sm:$0xf0]  ;;  %v2677_v56 = vor.u32 %v3920_v48, %v2676_v47  ;;  %1685 = vmatpush.bf16.msra.mxu2 %v2949_v46 }
  0x25   :  { %v2932_v52 = vld [vmem:[#allocation4 + $0x260] sm:$0xf]  ;;  %v3984_v53 = vld [vmem:[#allocation4 + $0x26c] sm:$0xf0]  ;;  %v2805_v57 = vor.u32 %v3952_v51, %v2804_v49  ;;  %1698 = vmatpush.bf16.msra.mxu3 %v3077_v50 }
  0x26   :  { %v3060_v54 = vld [vmem:[#allocation4 + $0x360] sm:$0xf]  ;;  %v4016_v55 = vld [vmem:[#allocation4 + $0x36c] sm:$0xf0]  ;;  %v2933_v58 = vor.u32 %v3984_v53, %v2932_v52  ;;  %1660 = vmatpush.bf16.msra.mxu0 %v2677_v56 }
  0x27   :  { %v2660_v59 = vld [vmem:[#allocation4 + $0x40] sm:$0xf]  ;;  %v3916_v60 = vld [vmem:[#allocation4 + $0x4c] sm:$0xf0]  ;;  %v3061_v62 = vor.u32 %v4016_v55, %v3060_v54  ;;  %1673 = vmatpush.bf16.msra.mxu1 %v2805_v57 }
  0x28   :  { %v2788_v61 = vld [vmem:[#allocation4 + $0x140] sm:$0xf]  ;;  %v3948_v63 = vld [vmem:[#allocation4 + $0x14c] sm:$0xf0]  ;;  %v2661_v4 = vor.u32 %v3916_v60, %v2660_v59  ;;  %1686 = vmatpush.bf16.msra.mxu2 %v2933_v58 }
  0x29   :  { %v2916_v0 = vld [vmem:[#allocation4 + $0x240] sm:$0xf]  ;;  %v3980_v1 = vld [vmem:[#allocation4 + $0x24c] sm:$0xf0]  ;;  %v2789_v5 = vor.u32 %v3948_v63, %v2788_v61  ;;  %1699 = vmatpush.bf16.msra.mxu3 %v3061_v62 }
  0x2a   :  { %v3044_v2 = vld [vmem:[#allocation4 + $0x340] sm:$0xf]  ;;  %v4012_v3 = vld [vmem:[#allocation4 + $0x34c] sm:$0xf0]  ;;  %v2917_v6 = vor.u32 %v3980_v1, %v2916_v0  ;;  %1661 = vmatpush.bf16.msra.mxu0 %v2661_v4 }
  0x2b   :  { %v2644_v7 = vld [vmem:[#allocation4 + $0x20] sm:$0xf]  ;;  %v3912_v8 = vld [vmem:[#allocation4 + $0x2c] sm:$0xf0]  ;;  %v3045_v10 = vor.u32 %v4012_v3, %v3044_v2  ;;  %1674 = vmatpush.bf16.msra.mxu1 %v2789_v5 }
  0x2c   :  { %v2772_v9 = vld [vmem:[#allocation4 + $0x120] sm:$0xf]  ;;  %v3944_v11 = vld [vmem:[#allocation4 + $0x12c] sm:$0xf0]  ;;  %v2645_v16 = vor.u32 %v3912_v8, %v2644_v7  ;;  %1687 = vmatpush.bf16.msra.mxu2 %v2917_v6 }
  0x2d   :  { %v2900_v12 = vld [vmem:[#allocation4 + $0x220] sm:$0xf]  ;;  %v3976_v13 = vld [vmem:[#allocation4 + $0x22c] sm:$0xf0]  ;;  %v2773_v19 = vor.u32 %v3944_v11, %v2772_v9  ;;  %1700 = vmatpush.bf16.msra.mxu3 %v3045_v10 }
  0x2e   :  { %v3028_v14 = vld [vmem:[#allocation4 + $0x320] sm:$0xf]  ;;  %v4008_v15 = vld [vmem:[#allocation4 + $0x32c] sm:$0xf0]  ;;  %v2901_v20 = vor.u32 %v3976_v13, %v2900_v12  ;;  %1662 = vmatpush.bf16.msra.mxu0 %v2645_v16 }
  0x2f   :  { %v2628_v17 = vld [vmem:[#allocation4] sm:$0xf]  ;;  %v3908_v18 = vld [vmem:[#allocation4 + $0xc] sm:$0xf0]  ;;  %v3029_v24 = vor.u32 %v4008_v15, %v3028_v14  ;;  %1675 = vmatpush.bf16.msra.mxu1 %v2773_v19 }
  0x30   :  { %v2756_v21 = vld [vmem:[#allocation4 + $0x100] sm:$0xf]  ;;  %v3940_v22 = vld [vmem:[#allocation4 + $0x10c] sm:$0xf0]  ;;  %v2629_v31 = vor.u32 %v3908_v18, %v2628_v17  ;;  %1688 = vmatpush.bf16.msra.mxu2 %v2901_v20 }
  0x31   :  { %v2884_v23 = vld [vmem:[#allocation4 + $0x200] sm:$0xf]  ;;  %v3972_v25 = vld [vmem:[#allocation4 + $0x20c] sm:$0xf0]  ;;  %v2757_v35 = vor.u32 %v3940_v22, %v2756_v21  ;;  %1701 = vmatpush.bf16.msra.mxu3 %v3029_v24 }
  0x32   :  { %v3012_v26 = vld [vmem:[#allocation4 + $0x300] sm:$0xf]  ;;  %v4004_v27 = vld [vmem:[#allocation4 + $0x30c] sm:$0xf0]  ;;  %v2885_v36 = vor.u32 %v3972_v25, %v2884_v23  ;;  %1663 = vmatpush.bf16.msra.mxu0 %v2629_v31 }
  0x33   :  { %v3252_v28 = vld [vmem:[#allocation4 + $0x4e0] sm:$0xf]  ;;  %v4064_v29 = vld [vmem:[#allocation4 + $0x4ec] sm:$0xf0]  ;;  %v3013_v39 = vor.u32 %v4004_v27, %v3012_v26  ;;  %1676 = vmatpush.bf16.msra.mxu1 %v2757_v35 }
  0x34   :  { %v3380_v30 = vld [vmem:[#allocation4 + $0x5e0] sm:$0xf]  ;;  %v4096_v32 = vld [vmem:[#allocation4 + $0x5ec] sm:$0xf0]  ;;  %v3253_v40 = vor.u32 %v4064_v29, %v3252_v28  ;;  %1689 = vmatpush.bf16.msra.mxu2 %v2885_v36 }
  0x35   :  { %v3508_v33 = vld [vmem:[#allocation4 + $0x6e0] sm:$0xf]  ;;  %v4128_v34 = vld [vmem:[#allocation4 + $0x6ec] sm:$0xf0]  ;;  %v3381_v41 = vor.u32 %v4096_v32, %v3380_v30  ;;  %1702 = vmatpush.bf16.msra.mxu3 %v3013_v39 }
  0x36   :  { %v3636_v37 = vld [vmem:[#allocation4 + $0x7e0] sm:$0xf]  ;;  %v4160_v38 = vld [vmem:[#allocation4 + $0x7ec] sm:$0xf0]  ;;  %v3509_v42 = vor.u32 %v4128_v34, %v3508_v33  ;;  %1708 = vmatpush.bf16.msrb.mxu0 %v3253_v40 }
  0x37   :  { %v3236_v43 = vld [vmem:[#allocation4 + $0x4c0] sm:$0xf]  ;;  %v4060_v44 = vld [vmem:[#allocation4 + $0x4cc] sm:$0xf0]  ;;  %v3637_v46 = vor.u32 %v4160_v38, %v3636_v37  ;;  %1721 = vmatpush.bf16.msrb.mxu1 %v3381_v41 }
  0x38   :  { %v3364_v45 = vld [vmem:[#allocation4 + $0x5c0] sm:$0xf]  ;;  %v4092_v47 = vld [vmem:[#allocation4 + $0x5cc] sm:$0xf0]  ;;  %v3237_v52 = vor.u32 %v4060_v44, %v3236_v43  ;;  %1734 = vmatpush.bf16.msrb.mxu2 %v3509_v42 }
  0x39   :  { %v3492_v48 = vld [vmem:[#allocation4 + $0x6c0] sm:$0xf]  ;;  %v4124_v49 = vld [vmem:[#allocation4 + $0x6cc] sm:$0xf0]  ;;  %v3365_v55 = vor.u32 %v4092_v47, %v3364_v45  ;;  %1747 = vmatpush.bf16.msrb.mxu3 %v3637_v46 }
  0x3a   :  { %v3620_v50 = vld [vmem:[#allocation4 + $0x7c0] sm:$0xf]  ;;  %v4156_v51 = vld [vmem:[#allocation4 + $0x7cc] sm:$0xf0]  ;;  %v3493_v56 = vor.u32 %v4124_v49, %v3492_v48  ;;  %1709 = vmatpush.bf16.msrb.mxu0 %v3237_v52  ;;  %v77_v52 = vld [vmem:[#allocation2 + $0x8] sm:$0xff] }
  0x3b   :  { %v3220_v53 = vld [vmem:[#allocation4 + $0x4a0] sm:$0xf]  ;;  %v4056_v54 = vld [vmem:[#allocation4 + $0x4ac] sm:$0xf0]  ;;  %v3621_v60 = vor.u32 %v4156_v51, %v3620_v50  ;;  %1722 = vmatpush.bf16.msrb.mxu1 %v3365_v55  ;;  %82 = vst [vmem:[#allocation1 + $0x20] ss:$4 sm:$0xff] %v77_v52 }
  0x3c   :  { %v3348_v57 = vld [vmem:[#allocation4 + $0x5a0] sm:$0xf]  ;;  %v4088_v58 = vld [vmem:[#allocation4 + $0x5ac] sm:$0xf0]  ;;  %v3221_v1 = vor.u32 %v4056_v54, %v3220_v53  ;;  %1735 = vmatpush.bf16.msrb.mxu2 %v3493_v56  ;;  %v4022_v52 = vld [vmem:[#allocation4 + $0x3a4] sm:$0xf] }
  0x3d   :  { %v76_v59 = vld [vmem:[#allocation2] sm:$0xff]  ;;  %v3476_v61 = vld [vmem:[#allocation4 + $0x6a0] sm:$0xf]  ;;  %v3349_v3 = vor.u32 %v4088_v58, %v3348_v57  ;;  %1748 = vmatpush.bf16.msrb.mxu3 %v3621_v60 }
  0x3e   :  { %v4120_v62 = vld [vmem:[#allocation4 + $0x6ac] sm:$0xf0]  ;;  %80 = vst [vmem:[#allocation1] ss:$4 sm:$0xff] %v76_v59  ;;  %v3604_v63 = vld [vmem:[#allocation4 + $0x7a0] sm:$0xf]  ;;  %1710 = vmatpush.bf16.msrb.mxu0 %v3221_v1 }
  0x3f   :  { %v4152_v0 = vld [vmem:[#allocation4 + $0x7ac] sm:$0xf0]  ;;  %v3204_v2 = vld [vmem:[#allocation4 + $0x480] sm:$0xf]  ;;  %v3477_v4 = vor.u32 %v4120_v62, %v3476_v61  ;;  %1723 = vmatpush.bf16.msrb.mxu1 %v3349_v3 }
  0x40   :  { %v4052_v5 = vld [vmem:[#allocation4 + $0x48c] sm:$0xf0]  ;;  %v3332_v6 = vld [vmem:[#allocation4 + $0x580] sm:$0xf]  ;;  %v3605_v8 = vor.u32 %v4152_v0, %v3604_v63 }
  0x41   :  { %v4084_v7 = vld [vmem:[#allocation4 + $0x58c] sm:$0xf0]  ;;  %v3460_v9 = vld [vmem:[#allocation4 + $0x680] sm:$0xf]  ;;  %v3205_v15 = vor.u32 %v4052_v5, %v3204_v2  ;;  %1736 = vmatpush.bf16.msrb.mxu2 %v3477_v4 }
  0x42   :  { %v4116_v10 = vld [vmem:[#allocation4 + $0x68c] sm:$0xf0]  ;;  %v3588_v11 = vld [vmem:[#allocation4 + $0x780] sm:$0xf]  ;;  %v3333_v20 = vor.u32 %v4084_v7, %v3332_v6  ;;  %1749 = vmatpush.bf16.msrb.mxu3 %v3605_v8  ;;  %v3934_v6 = vld [vmem:[#allocation4 + $0xe4] sm:$0xf] }
  0x43   :  { %v4148_v12 = vld [vmem:[#allocation4 + $0x78c] sm:$0xf0]  ;;  %v3188_v13 = vld [vmem:[#allocation4 + $0x460] sm:$0xf]  ;;  %v3461_v21 = vor.u32 %v4116_v10, %v3460_v9  ;;  %1711 = vmatpush.bf16.msrb.mxu0 %v3205_v15  ;;  %v2742_v7 = vld [vmem:[#allocation4 + $0xf0] sm:$0xf0] }
  0x44   :  { %v4048_v14 = vld [vmem:[#allocation4 + $0x46c] sm:$0xf0]  ;;  %v3316_v16 = vld [vmem:[#allocation4 + $0x560] sm:$0xf]  ;;  %v3589_v24 = vor.u32 %v4148_v12, %v3588_v11  ;;  %1724 = vmatpush.bf16.msrb.mxu1 %v3333_v20  ;;  %v3966_v8 = vld [vmem:[#allocation4 + $0x1e4] sm:$0xf] }
  0x45   :  { %v4080_v17 = vld [vmem:[#allocation4 + $0x56c] sm:$0xf0]  ;;  %v3444_v18 = vld [vmem:[#allocation4 + $0x660] sm:$0xf]  ;;  %v3189_v33 = vor.u32 %v4048_v14, %v3188_v13  ;;  %1737 = vmatpush.bf16.msrb.mxu2 %v3461_v21  ;;  %v2870_v9 = vld [vmem:[#allocation4 + $0x1f0] sm:$0xf0]  ;;  %v2745_v21 = vor.u32 %v3934_v6, %v2742_v7 }
  0x46   :  { %v4112_v19 = vld [vmem:[#allocation4 + $0x66c] sm:$0xf0]  ;;  %v85_v22 = vld.sshfl [vmem:[#allocation1 + $0x10] sm:$0xff pattern:$0x73625140]  ;;  %v3317_v34 = vor.u32 %v4080_v17, %v3316_v16  ;;  %1750 = vmatpush.bf16.msrb.mxu3 %v3589_v24  ;;  %v2873_v24 = vor.u32 %v3966_v8, %v2870_v9 }
  0x47   :  { %v83_v23 = vld.sshfl [vmem:[#allocation1] sm:$0xff pattern:$0x73625140]  ;;  %v4387_v25 = vpack.c.bf16 %v85_v22, %v85_v22  ;;  %v86_v27 = vld.sshfl [vmem:[#allocation1 + $0x18] sm:$0xff pattern:$0x73625140]  ;;  %v3445_v35 = vor.u32 %v4112_v19, %v3444_v18  ;;  %1712 = vmatpush.bf16.msrb.mxu0 %v3189_v33 }
  0x48   :  { %v4389_v26 = vpack.c.bf16 %v83_v23, %v83_v23  ;;  %v84_v28 = vld.sshfl [vmem:[#allocation1 + $0x8] sm:$0xff pattern:$0x73625140]  ;;  %v3572_v29 = vld [vmem:[#allocation4 + $0x760] sm:$0xf]  ;;  %v4391_v31 = vpack.c.bf16 %v86_v27, %v86_v27  ;;  %1725 = vmatpush.bf16.msrb.mxu1 %v3317_v34 }
  0x49   :  { %v4144_v30 = vld [vmem:[#allocation4 + $0x76c] sm:$0xf0]  ;;  %v4393_v32 = vpack.c.bf16 %v84_v28, %v84_v28  ;;  %1690 = vmatmul.bf16.vlgmr.msra.gmra.mxu2 %v4387_v25  ;;  %v3172_v36 = vld [vmem:[#allocation4 + $0x440] sm:$0xf]  ;;  %v3998_v10 = vld [vmem:[#allocation4 + $0x2e4] sm:$0xf] }
  0x4a   :  { %v4044_v37 = vld [vmem:[#allocation4 + $0x44c] sm:$0xf0]  ;;  %v3300_v38 = vld [vmem:[#allocation4 + $0x540] sm:$0xf]  ;;  %v3573_v39 = vor.u32 %v4144_v30, %v3572_v29  ;;  %1664 = vmatmul.bf16.vlgmr.msra.gmra.mxu0 %v4389_v26  ;;  %1703 = vmatmul.bf16.vlgmr.msra.gmra.mxu3 %v4391_v31  ;;  %v2998_v12 = vld [vmem:[#allocation4 + $0x2f0] sm:$0xf0] }
  0x4b   :  { %v4076_v40 = vld [vmem:[#allocation4 + $0x54c] sm:$0xf0]  ;;  %v3428_v41 = vld [vmem:[#allocation4 + $0x640] sm:$0xf]  ;;  %1677 = vmatmul.bf16.vlgmr.msra.gmra.mxu1 %v4393_v32  ;;  %v3173_v45 = vor.u32 %v4044_v37, %v3172_v36  ;;  %1738 = vmatpush.bf16.msrb.mxu2 %v3445_v35  ;;  %v4030_v13 = vld [vmem:[#allocation4 + $0x3e4] sm:$0xf]  ;;  %v3001_v27 = vor.u32 %v3998_v10, %v2998_v12 }
  0x4c   :  { %v4108_v42 = vld [vmem:[#allocation4 + $0x64c] sm:$0xf0]  ;;  %v3556_v43 = vld [vmem:[#allocation4 + $0x740] sm:$0xf]  ;;  %v3301_v48 = vor.u32 %v4076_v40, %v3300_v38  ;;  %1751 = vmatpush.bf16.msrb.mxu3 %v3573_v39  ;;  %v3126_v14 = vld [vmem:[#allocation4 + $0x3f0] sm:$0xf0] }
  0x4d   :  { %v4140_v44 = vld [vmem:[#allocation4 + $0x74c] sm:$0xf0]  ;;  %v3156_v46 = vld [vmem:[#allocation4 + $0x420] sm:$0xf]  ;;  %v3429_v49 = vor.u32 %v4108_v42, %v3428_v41  ;;  %1713 = vmatpush.bf16.msrb.mxu0 %v3173_v45  ;;  %v3930_v17 = vld [vmem:[#allocation4 + $0xc4] sm:$0xf]  ;;  %v3129_v30 = vor.u32 %v4030_v13, %v3126_v14 }
  0x4e   :  { %v4040_v47 = vld [vmem:[#allocation4 + $0x42c] sm:$0xf0]  ;;  %v3284_v50 = vld [vmem:[#allocation4 + $0x520] sm:$0xf]  ;;  %v3557_v53 = vor.u32 %v4140_v44, %v3556_v43  ;;  %1726 = vmatpush.bf16.msrb.mxu1 %v3301_v48  ;;  %v2726_v18 = vld [vmem:[#allocation4 + $0xd0] sm:$0xf0] }
  0x4f   :  { %v4072_v51 = vld [vmem:[#allocation4 + $0x52c] sm:$0xf0]  ;;  %v3412_v54 = vld [vmem:[#allocation4 + $0x620] sm:$0xf]  ;;  %v3157_v59 = vor.u32 %v4040_v47, %v3156_v46  ;;  %1739 = vmatpush.bf16.msrb.mxu2 %v3429_v49  ;;  %v3962_v28 = vld [vmem:[#allocation4 + $0x1c4] sm:$0xf]  ;;  %v2729_v41 = vor.u32 %v3930_v17, %v2726_v18 }
  0x50   :  { %v4104_v55 = vld [vmem:[#allocation4 + $0x62c] sm:$0xf0]  ;;  %v3540_v56 = vld [vmem:[#allocation4 + $0x720] sm:$0xf]  ;;  %v3285_v63 = vor.u32 %v4072_v51, %v3284_v50  ;;  %1752 = vmatpush.bf16.msrb.mxu3 %v3557_v53  ;;  %v2854_v33 = vld [vmem:[#allocation4 + $0x1d0] sm:$0xf0] }
  0x51   :  { %v4136_v57 = vld [vmem:[#allocation4 + $0x72c] sm:$0xf0]  ;;  %v3140_v58 = vld [vmem:[#allocation4 + $0x400] sm:$0xf]  ;;  %v3413_v0 = vor.u32 %v4104_v55, %v3412_v54  ;;  %1714 = vmatpush.bf16.msrb.mxu0 %v3157_v59  ;;  %v3994_v34 = vld [vmem:[#allocation4 + $0x2c4] sm:$0xf]  ;;  %v2857_v43 = vor.u32 %v3962_v28, %v2854_v33 }
  0x52   :  { %v4036_v60 = vld [vmem:[#allocation4 + $0x40c] sm:$0xf0]  ;;  %v3268_v61 = vld [vmem:[#allocation4 + $0x500] sm:$0xf]  ;;  %v3541_v4 = vor.u32 %v4136_v57, %v3540_v56  ;;  %1727 = vmatpush.bf16.msrb.mxu1 %v3285_v63  ;;  %v2982_v35 = vld [vmem:[#allocation4 + $0x2d0] sm:$0xf0] }
  0x53   :  { %v4068_v62 = vld [vmem:[#allocation4 + $0x50c] sm:$0xf0]  ;;  %v3396_v1 = vld [vmem:[#allocation4 + $0x600] sm:$0xf]  ;;  %v3141_v11 = vor.u32 %v4036_v60, %v3140_v58  ;;  %1740 = vmatpush.bf16.msrb.mxu2 %v3413_v0  ;;  %v4026_v37 = vld [vmem:[#allocation4 + $0x3c4] sm:$0xf]  ;;  %v2985_v44 = vor.u32 %v3994_v34, %v2982_v35 }
  0x54   :  { %v4100_v2 = vld [vmem:[#allocation4 + $0x60c] sm:$0xf0]  ;;  %v3524_v3 = vld [vmem:[#allocation4 + $0x700] sm:$0xf]  ;;  %v3269_v15 = vor.u32 %v4068_v62, %v3268_v61  ;;  %1753 = vmatpush.bf16.msrb.mxu3 %v3541_v4  ;;  %v3110_v38 = vld [vmem:[#allocation4 + $0x3d0] sm:$0xf0] }
  0x55   :  { %v4132_v5 = vld [vmem:[#allocation4 + $0x70c] sm:$0xf0]  ;;  %v3397_v16 = vor.u32 %v4100_v2, %v3396_v1  ;;  %v89_v19 = vld.sshfl [vmem:[#allocation1 + $0x30] sm:$0xff pattern:$0x73625140]  ;;  %1715 = vmatpush.bf16.msrb.mxu0 %v3141_v11  ;;  %v3113_v48 = vor.u32 %v4026_v37, %v3110_v38 }
  0x56   :  { %v3525_v20 = vor.u32 %v4132_v5, %v3524_v3  ;;  %v87_v22 = vld.sshfl [vmem:[#allocation1 + $0x20] sm:$0xff pattern:$0x73625140]  ;;  %v90_v23 = vld.sshfl [vmem:[#allocation1 + $0x38] sm:$0xff pattern:$0x73625140]  ;;  %v4399_v36 = vpack.c.bf16 %v89_v19, %v89_v19  ;;  %1728 = vmatpush.bf16.msrb.mxu1 %v3269_v15 }
  0x57   :  { %v88_v29 = vld.sshfl [vmem:[#allocation1 + $0x28] sm:$0xff pattern:$0x73625140]  ;;  %1741 = vmatpush.bf16.msrb.mxu2 %v3397_v16  ;;  %v4401_v39 = vpack.c.bf16 %v87_v22, %v87_v22  ;;  %v4403_v40 = vpack.c.bf16 %v90_v23, %v90_v23  ;;  %v3926_v45 = vld [vmem:[#allocation4 + $0xa4] sm:$0xf] }
  0x58   :  { %1754 = vmatpush.bf16.msrb.mxu3 %v3525_v20  ;;  %v4405_v42 = vpack.c.bf16 %v88_v29, %v88_v29  ;;  %v2710_v46 = vld [vmem:[#allocation4 + $0xb0] sm:$0xf0]  ;;  %v3958_v47 = vld [vmem:[#allocation4 + $0x1a4] sm:$0xf] }
  0x59   :  { %1760 = vmatpush.bf16.msra.mxu0 %v2745_v21  ;;  %v2838_v49 = vld [vmem:[#allocation4 + $0x1b0] sm:$0xf0]  ;;  %v3990_v50 = vld [vmem:[#allocation4 + $0x2a4] sm:$0xf]  ;;  %v2713_v54 = vor.u32 %v3926_v45, %v2710_v46 }
  0x5a   :  { %1773 = vmatpush.bf16.msra.mxu1 %v2873_v24  ;;  %1742 = vmatmul.bf16.vlgmr.msrb.gmra.mxu2 %v4399_v36  ;;  %v2966_v51 = vld [vmem:[#allocation4 + $0x2b0] sm:$0xf0]  ;;  %v2841_v55 = vor.u32 %v3958_v47, %v2838_v49  ;;  %v3922_v57 = vld [vmem:[#allocation4 + $0x84] sm:$0xf] }
  0x5b   :  { %1786 = vmatpush.bf16.msra.mxu2 %v3001_v27  ;;  %1716 = vmatmul.bf16.vlgmr.msrb.gmra.mxu0 %v4401_v39  ;;  %v3094_v53 = vld [vmem:[#allocation4 + $0x3b0] sm:$0xf0]  ;;  %v2969_v56 = vor.u32 %v3990_v50, %v2966_v51  ;;  %v3954_v59 = vld [vmem:[#allocation4 + $0x184] sm:$0xf] }
  0x5c   :  { %1799 = vmatpush.bf16.msra.mxu3 %v3129_v30  ;;  %1729 = vmatmul.bf16.vlgmr.msrb.gmra.mxu1 %v4405_v42  ;;  %v2694_v58 = vld [vmem:[#allocation4 + $0x90] sm:$0xf0]  ;;  %v3097_v60 = vor.u32 %v4022_v52, %v3094_v53  ;;  %v3986_v62 = vld [vmem:[#allocation4 + $0x284] sm:$0xf] }
  0x5d   :  { %1755 = vmatmul.bf16.vlgmr.msrb.gmra.mxu3 %v4403_v40  ;;  %1761 = vmatpush.bf16.msra.mxu0 %v2729_v41  ;;  %v2822_v61 = vld [vmem:[#allocation4 + $0x190] sm:$0xf0]  ;;  %v4018_v0 = vld [vmem:[#allocation4 + $0x384] sm:$0xf]  ;;  %v2697_v2 = vor.u32 %v3922_v57, %v2694_v58 }
  0x5e   :  { %1774 = vmatpush.bf16.msra.mxu1 %v2857_v43  ;;  %v2950_v63 = vld [vmem:[#allocation4 + $0x290] sm:$0xf0]  ;;  %v2825_v3 = vor.u32 %v3954_v59, %v2822_v61  ;;  %v3918_v5 = vld [vmem:[#allocation4 + $0x64] sm:$0xf] }
  0x5f   :  { %1787 = vmatpush.bf16.msra.mxu2 %v2985_v44  ;;  %v3078_v1 = vld [vmem:[#allocation4 + $0x390] sm:$0xf0]  ;;  %v2953_v4 = vor.u32 %v3986_v62, %v2950_v63  ;;  %v3950_v7 = vld [vmem:[#allocation4 + $0x164] sm:$0xf] }
  0x60   :  { %1800 = vmatpush.bf16.msra.mxu3 %v3113_v48  ;;  %v2678_v6 = vld [vmem:[#allocation4 + $0x70] sm:$0xf0]  ;;  %v3081_v8 = vor.u32 %v4018_v0, %v3078_v1  ;;  %v3982_v10 = vld [vmem:[#allocation4 + $0x264] sm:$0xf] }
  0x61   :  { %1762 = vmatpush.bf16.msra.mxu0 %v2713_v54  ;;  %v2806_v9 = vld [vmem:[#allocation4 + $0x170] sm:$0xf0]  ;;  %v4014_v12 = vld [vmem:[#allocation4 + $0x364] sm:$0xf]  ;;  %v2681_v14 = vor.u32 %v3918_v5, %v2678_v6 }
  0x62   :  { %1775 = vmatpush.bf16.msra.mxu1 %v2841_v55  ;;  %v2934_v11 = vld [vmem:[#allocation4 + $0x270] sm:$0xf0]  ;;  %v2809_v15 = vor.u32 %v3950_v7, %v2806_v9  ;;  %v3914_v17 = vld [vmem:[#allocation4 + $0x44] sm:$0xf] }
  0x63   :  { %1788 = vmatpush.bf16.msra.mxu2 %v2969_v56  ;;  %v3062_v13 = vld [vmem:[#allocation4 + $0x370] sm:$0xf0]  ;;  %v2937_v16 = vor.u32 %v3982_v10, %v2934_v11  ;;  %v3946_v19 = vld [vmem:[#allocation4 + $0x144] sm:$0xf] }
  0x64   :  { %1801 = vmatpush.bf16.msra.mxu3 %v3097_v60  ;;  %v2662_v18 = vld [vmem:[#allocation4 + $0x50] sm:$0xf0]  ;;  %v3065_v20 = vor.u32 %v4014_v12, %v3062_v13  ;;  %v3978_v22 = vld [vmem:[#allocation4 + $0x244] sm:$0xf] }
  0x65   :  { %1763 = vmatpush.bf16.msra.mxu0 %v2697_v2  ;;  %v2790_v21 = vld [vmem:[#allocation4 + $0x150] sm:$0xf0]  ;;  %v4010_v24 = vld [vmem:[#allocation4 + $0x344] sm:$0xf]  ;;  %v2665_v28 = vor.u32 %v3914_v17, %v2662_v18 }
  0x66   :  { %1776 = vmatpush.bf16.msra.mxu1 %v2825_v3  ;;  %v2918_v23 = vld [vmem:[#allocation4 + $0x250] sm:$0xf0]  ;;  %v2793_v29 = vor.u32 %v3946_v19, %v2790_v21  ;;  %v3910_v33 = vld [vmem:[#allocation4 + $0x24] sm:$0xf] }
  0x67   :  { %1789 = vmatpush.bf16.msra.mxu2 %v2953_v4  ;;  %v3046_v27 = vld [vmem:[#allocation4 + $0x350] sm:$0xf0]  ;;  %v2921_v30 = vor.u32 %v3978_v22, %v2918_v23  ;;  %v3942_v35 = vld [vmem:[#allocation4 + $0x124] sm:$0xf] }
  0x68   :  { %1802 = vmatpush.bf16.msra.mxu3 %v3081_v8  ;;  %v2646_v34 = vld [vmem:[#allocation4 + $0x30] sm:$0xf0]  ;;  %v3049_v37 = vor.u32 %v4010_v24, %v3046_v27  ;;  %v3974_v41 = vld [vmem:[#allocation4 + $0x224] sm:$0xf] }
  0x69   :  { %1764 = vmatpush.bf16.msra.mxu0 %v2681_v14  ;;  %v2774_v38 = vld [vmem:[#allocation4 + $0x130] sm:$0xf0]  ;;  %v4006_v44 = vld [vmem:[#allocation4 + $0x324] sm:$0xf]  ;;  %v2649_v46 = vor.u32 %v3910_v33, %v2646_v34 }
  0x6a   :  { %1777 = vmatpush.bf16.msra.mxu1 %v2809_v15  ;;  %v2902_v43 = vld [vmem:[#allocation4 + $0x230] sm:$0xf0]  ;;  %v3906_v47 = vld [vmem:[#allocation4 + $0x4] sm:$0xf]  ;;  %v2777_v49 = vor.u32 %v3942_v35, %v2774_v38 }
  0x6b   :  { %1790 = vmatpush.bf16.msra.mxu2 %v2937_v16  ;;  %v3030_v45 = vld [vmem:[#allocation4 + $0x330] sm:$0xf0]  ;;  %v2905_v50 = vor.u32 %v3974_v41, %v2902_v43  ;;  %v3938_v51 = vld [vmem:[#allocation4 + $0x104] sm:$0xf] }
  0x6c   :  { %1803 = vmatpush.bf16.msra.mxu3 %v3065_v20  ;;  %v2630_v48 = vld [vmem:[#allocation4 + $0x10] sm:$0xf0]  ;;  %v3970_v53 = vld [vmem:[#allocation4 + $0x204] sm:$0xf]  ;;  %v3033_v54 = vor.u32 %v4006_v44, %v3030_v45 }
  0x6d   :  { %1765 = vmatpush.bf16.msra.mxu0 %v2665_v28  ;;  %v2758_v52 = vld [vmem:[#allocation4 + $0x110] sm:$0xf0]  ;;  %v4002_v56 = vld [vmem:[#allocation4 + $0x304] sm:$0xf]  ;;  %v2633_v61 = vor.u32 %v3906_v47, %v2630_v48 }
  0x6e   :  { %1778 = vmatpush.bf16.msra.mxu1 %v2793_v29  ;;  %v2886_v55 = vld [vmem:[#allocation4 + $0x210] sm:$0xf0]  ;;  %v4062_v58 = vld [vmem:[#allocation4 + $0x4e4] sm:$0xf]  ;;  %v2761_v1 = vor.u32 %v3938_v51, %v2758_v52 }
  0x6f   :  { %1791 = vmatpush.bf16.msra.mxu2 %v2921_v30  ;;  %v3014_v57 = vld [vmem:[#allocation4 + $0x310] sm:$0xf0]  ;;  %v4094_v60 = vld [vmem:[#allocation4 + $0x5e4] sm:$0xf]  ;;  %v2889_v2 = vor.u32 %v3970_v53, %v2886_v55 }
  0x70   :  { %1804 = vmatpush.bf16.msra.mxu3 %v3049_v37  ;;  %v3254_v59 = vld [vmem:[#allocation4 + $0x4f0] sm:$0xf0]  ;;  %v4126_v63 = vld [vmem:[#allocation4 + $0x6e4] sm:$0xf]  ;;  %v3017_v5 = vor.u32 %v4002_v56, %v3014_v57 }
  0x71   :  { %1766 = vmatpush.bf16.msra.mxu0 %v2649_v46  ;;  %v3382_v62 = vld [vmem:[#allocation4 + $0x5f0] sm:$0xf0]  ;;  %v4158_v3 = vld [vmem:[#allocation4 + $0x7e4] sm:$0xf]  ;;  %v3257_v6 = vor.u32 %v4062_v58, %v3254_v59 }
  0x72   :  { %v3510_v0 = vld [vmem:[#allocation4 + $0x6f0] sm:$0xf0]  ;;  %1779 = vmatpush.bf16.msra.mxu1 %v2777_v49  ;;  %v3385_v7 = vor.u32 %v4094_v60, %v3382_v62  ;;  %v4058_v9 = vld [vmem:[#allocation4 + $0x4c4] sm:$0xf] }
  0x73   :  { %1792 = vmatpush.bf16.msra.mxu2 %v2905_v50  ;;  %v3638_v4 = vld [vmem:[#allocation4 + $0x7f0] sm:$0xf0]  ;;  %v3513_v8 = vor.u32 %v4126_v63, %v3510_v0  ;;  %v4090_v11 = vld [vmem:[#allocation4 + $0x5c4] sm:$0xf] }
  0x74   :  { %1805 = vmatpush.bf16.msra.mxu3 %v3033_v54  ;;  %v3238_v10 = vld [vmem:[#allocation4 + $0x4d0] sm:$0xf0]  ;;  %v3641_v12 = vor.u32 %v4158_v3, %v3638_v4  ;;  %v4122_v14 = vld [vmem:[#allocation4 + $0x6c4] sm:$0xf] }
  0x75   :  { %1767 = vmatpush.bf16.msra.mxu0 %v2633_v61  ;;  %v3366_v13 = vld [vmem:[#allocation4 + $0x5d0] sm:$0xf0]  ;;  %v4154_v16 = vld [vmem:[#allocation4 + $0x7c4] sm:$0xf]  ;;  %v3241_v18 = vor.u32 %v4058_v9, %v3238_v10 }
  0x76   :  { %v3494_v15 = vld [vmem:[#allocation4 + $0x6d0] sm:$0xf0]  ;;  %1780 = vmatpush.bf16.msra.mxu1 %v2761_v1  ;;  %v3369_v19 = vor.u32 %v4090_v11, %v3366_v13  ;;  %v4054_v21 = vld [vmem:[#allocation4 + $0x4a4] sm:$0xf] }
  0x77   :  { %1793 = vmatpush.bf16.msra.mxu2 %v2889_v2  ;;  %v3622_v17 = vld [vmem:[#allocation4 + $0x7d0] sm:$0xf0]  ;;  %v3497_v20 = vor.u32 %v4122_v14, %v3494_v15  ;;  %v4086_v23 = vld [vmem:[#allocation4 + $0x5a4] sm:$0xf] }
  0x78   :  { %1806 = vmatpush.bf16.msra.mxu3 %v3017_v5  ;;  %v3222_v22 = vld [vmem:[#allocation4 + $0x4b0] sm:$0xf0]  ;;  %v3625_v24 = vor.u32 %v4154_v16, %v3622_v17  ;;  %v4118_v28 = vld [vmem:[#allocation4 + $0x6a4] sm:$0xf]  ;;  %1768 = vmatmul.bf16.vlgmr.msra.gmra.mxu0 %v4389_v26 }
  0x79   :  { %1812 = vmatpush.bf16.msrb.mxu0 %v3257_v6  ;;  %v3350_v27 = vld [vmem:[#allocation4 + $0x5b0] sm:$0xf0]  ;;  %v4150_v30 = vld [vmem:[#allocation4 + $0x7a4] sm:$0xf]  ;;  %v3225_v34 = vor.u32 %v4054_v21, %v3222_v22  ;;  %1781 = vmatmul.bf16.vlgmr.msra.gmra.mxu1 %v4393_v32 }
  0x7a   :  { %1825 = vmatpush.bf16.msrb.mxu1 %v3385_v7  ;;  %v3478_v29 = vld [vmem:[#allocation4 + $0x6b0] sm:$0xf0]  ;;  %1794 = vmatmul.bf16.vlgmr.msra.gmra.mxu2 %v4387_v25  ;;  %v3353_v35 = vor.u32 %v4086_v23, %v3350_v27  ;;  %v4050_v38 = vld [vmem:[#allocation4 + $0x484] sm:$0xf] }
  0x7b   :  { %1838 = vmatpush.bf16.msrb.mxu2 %v3513_v8  ;;  %v3606_v33 = vld [vmem:[#allocation4 + $0x7b0] sm:$0xf0]  ;;  %1807 = vmatmul.bf16.vlgmr.msra.gmra.mxu3 %v4391_v31  ;;  %v3481_v37 = vor.u32 %v4118_v28, %v3478_v29  ;;  %v4082_v43 = vld [vmem:[#allocation4 + $0x584] sm:$0xf] }
  0x7c   :  { %1851 = vmatpush.bf16.msrb.mxu3 %v3641_v12  ;;  %v3206_v41 = vld [vmem:[#allocation4 + $0x490] sm:$0xf0]  ;;  %v3609_v44 = vor.u32 %v4150_v30, %v3606_v33  ;;  %v4114_v46 = vld [vmem:[#allocation4 + $0x684] sm:$0xf] }
  0x7d   :  { %1813 = vmatpush.bf16.msrb.mxu0 %v3241_v18  ;;  %v3334_v45 = vld [vmem:[#allocation4 + $0x590] sm:$0xf0]  ;;  %v4146_v48 = vld [vmem:[#allocation4 + $0x784] sm:$0xf]  ;;  %v3209_v50 = vor.u32 %v4050_v38, %v3206_v41  ;;  %v2748_v41 = vld [vmem:[#allocation4 + $0xe8] sm:$0xf] }
  0x7e   :  { %1826 = vmatpush.bf16.msrb.mxu1 %v3369_v19  ;;  %v3462_v47 = vld [vmem:[#allocation4 + $0x690] sm:$0xf0]  ;;  %v3337_v51 = vor.u32 %v4082_v43, %v3334_v45  ;;  %v4046_v53 = vld [vmem:[#allocation4 + $0x464] sm:$0xf]  ;;  %v3937_v43 = vld [vmem:[#allocation4 + $0xf4] sm:$0xf0] }
  0x7f   :  { %1839 = vmatpush.bf16.msrb.mxu2 %v3497_v20  ;;  %v3590_v49 = vld [vmem:[#allocation4 + $0x790] sm:$0xf0]  ;;  %v3465_v52 = vor.u32 %v4114_v46, %v3462_v47  ;;  %v4078_v55 = vld [vmem:[#allocation4 + $0x564] sm:$0xf]  ;;  %v3969_v46 = vld [vmem:[#allocation4 + $0x1f4] sm:$0xf0] }
  0x80   :  { %1852 = vmatpush.bf16.msrb.mxu3 %v3625_v24  ;;  %v3190_v54 = vld [vmem:[#allocation4 + $0x470] sm:$0xf0]  ;;  %v3593_v56 = vor.u32 %v4146_v48, %v3590_v49  ;;  %v4110_v58 = vld [vmem:[#allocation4 + $0x664] sm:$0xf]  ;;  %v3004_v47 = vld [vmem:[#allocation4 + $0x2e8] sm:$0xf] }
  0x81   :  { %1814 = vmatpush.bf16.msrb.mxu0 %v3225_v34  ;;  %v3318_v57 = vld [vmem:[#allocation4 + $0x570] sm:$0xf0]  ;;  %v4142_v60 = vld [vmem:[#allocation4 + $0x764] sm:$0xf]  ;;  %v3193_v62 = vor.u32 %v4046_v53, %v3190_v54  ;;  %v4001_v48 = vld [vmem:[#allocation4 + $0x2f4] sm:$0xf0]  ;;  %v2749_v54 = vor.u32 %v3937_v43, %v2748_v41 }
  0x82   :  { %1827 = vmatpush.bf16.msrb.mxu1 %v3353_v35  ;;  %v3446_v59 = vld [vmem:[#allocation4 + $0x670] sm:$0xf0]  ;;  %v3321_v63 = vor.u32 %v4078_v55, %v3318_v57  ;;  %v4042_v1 = vld [vmem:[#allocation4 + $0x444] sm:$0xf]  ;;  %v2732_v57 = vld [vmem:[#allocation4 + $0xc8] sm:$0xf] }
  0x83   :  { %1840 = vmatpush.bf16.msrb.mxu2 %v3481_v37  ;;  %v3574_v61 = vld [vmem:[#allocation4 + $0x770] sm:$0xf0]  ;;  %v3449_v0 = vor.u32 %v4110_v58, %v3446_v59  ;;  %v4074_v3 = vld [vmem:[#allocation4 + $0x544] sm:$0xf]  ;;  %v3933_v58 = vld [vmem:[#allocation4 + $0xd4] sm:$0xf0] }
  0x84   :  { %1853 = vmatpush.bf16.msrb.mxu3 %v3609_v44  ;;  %v3174_v2 = vld [vmem:[#allocation4 + $0x450] sm:$0xf0]  ;;  %v3577_v4 = vor.u32 %v4142_v60, %v3574_v61  ;;  %v4106_v6 = vld [vmem:[#allocation4 + $0x644] sm:$0xf]  ;;  %v2876_v44 = vld [vmem:[#allocation4 + $0x1e8] sm:$0xf] }
  0x85   :  { %1815 = vmatpush.bf16.msrb.mxu0 %v3209_v50  ;;  %v3302_v5 = vld [vmem:[#allocation4 + $0x550] sm:$0xf0]  ;;  %v4138_v8 = vld [vmem:[#allocation4 + $0x744] sm:$0xf]  ;;  %v3177_v10 = vor.u32 %v4042_v1, %v3174_v2  ;;  %v2877_v55 = vor.u32 %v3969_v46, %v2876_v44  ;;  %v2860_v59 = vld [vmem:[#allocation4 + $0x1c8] sm:$0xf]  ;;  %v2733_v2 = vor.u32 %v3933_v58, %v2732_v57 }
  0x86   :  { %1828 = vmatpush.bf16.msrb.mxu1 %v3337_v51  ;;  %v3430_v7 = vld [vmem:[#allocation4 + $0x650] sm:$0xf0]  ;;  %v3305_v11 = vor.u32 %v4074_v3, %v3302_v5  ;;  %v4038_v13 = vld [vmem:[#allocation4 + $0x424] sm:$0xf]  ;;  %v3132_v51 = vld [vmem:[#allocation4 + $0x3e8] sm:$0xf] }
  0x87   :  { %1841 = vmatpush.bf16.msrb.mxu2 %v3465_v52  ;;  %v3558_v9 = vld [vmem:[#allocation4 + $0x750] sm:$0xf0]  ;;  %v3433_v12 = vor.u32 %v4106_v6, %v3430_v7  ;;  %v4070_v15 = vld [vmem:[#allocation4 + $0x524] sm:$0xf]  ;;  %v4033_v52 = vld [vmem:[#allocation4 + $0x3f4] sm:$0xf0] }
  0x88   :  { %1854 = vmatpush.bf16.msrb.mxu3 %v3593_v56  ;;  %v3158_v14 = vld [vmem:[#allocation4 + $0x430] sm:$0xf0]  ;;  %v3561_v16 = vor.u32 %v4138_v8, %v3558_v9  ;;  %v4102_v18 = vld [vmem:[#allocation4 + $0x624] sm:$0xf]  ;;  %v3005_v56 = vor.u32 %v4001_v48, %v3004_v47  ;;  %v3133_v60 = vor.u32 %v4033_v52, %v3132_v51  ;;  %v3965_v61 = vld [vmem:[#allocation4 + $0x1d4] sm:$0xf0] }
  0x89   :  { %1816 = vmatpush.bf16.msrb.mxu0 %v3193_v62  ;;  %v3286_v17 = vld [vmem:[#allocation4 + $0x530] sm:$0xf0]  ;;  %v4134_v20 = vld [vmem:[#allocation4 + $0x724] sm:$0xf]  ;;  %v3161_v22 = vor.u32 %v4038_v13, %v3158_v14  ;;  %v2988_v62 = vld [vmem:[#allocation4 + $0x2c8] sm:$0xf]  ;;  %v2861_v3 = vor.u32 %v3965_v61, %v2860_v59 }
  0x8a   :  { %1829 = vmatpush.bf16.msrb.mxu1 %v3321_v63  ;;  %v3414_v19 = vld [vmem:[#allocation4 + $0x630] sm:$0xf0]  ;;  %v4034_v23 = vld [vmem:[#allocation4 + $0x404] sm:$0xf]  ;;  %v3289_v27 = vor.u32 %v4070_v15, %v3286_v17  ;;  %v3997_v63 = vld [vmem:[#allocation4 + $0x2d4] sm:$0xf0] }
  0x8b   :  { %1842 = vmatpush.bf16.msrb.mxu2 %v3449_v0  ;;  %v3542_v21 = vld [vmem:[#allocation4 + $0x730] sm:$0xf0]  ;;  %v3417_v28 = vor.u32 %v4102_v18, %v3414_v19  ;;  %v4066_v29 = vld [vmem:[#allocation4 + $0x504] sm:$0xf]  ;;  %v3116_v0 = vld [vmem:[#allocation4 + $0x3c8] sm:$0xf] }
  0x8c   :  { %1855 = vmatpush.bf16.msrb.mxu3 %v3577_v4  ;;  %v3142_v24 = vld [vmem:[#allocation4 + $0x410] sm:$0xf0]  ;;  %v4098_v33 = vld [vmem:[#allocation4 + $0x604] sm:$0xf]  ;;  %v3545_v34 = vor.u32 %v4134_v20, %v3542_v21  ;;  %v4029_v1 = vld [vmem:[#allocation4 + $0x3d4] sm:$0xf0]  ;;  %v2989_v4 = vor.u32 %v3997_v63, %v2988_v62 }
  0x8d   :  { %1817 = vmatpush.bf16.msrb.mxu0 %v3177_v10  ;;  %v3270_v30 = vld [vmem:[#allocation4 + $0x510] sm:$0xf0]  ;;  %v4130_v37 = vld [vmem:[#allocation4 + $0x704] sm:$0xf]  ;;  %v3145_v45 = vor.u32 %v4034_v23, %v3142_v24  ;;  %v2716_v5 = vld [vmem:[#allocation4 + $0xa8] sm:$0xf]  ;;  %v3117_v8 = vor.u32 %v4029_v1, %v3116_v0 }
  0x8e   :  { %1830 = vmatpush.bf16.msrb.mxu1 %v3305_v11  ;;  %v3398_v35 = vld [vmem:[#allocation4 + $0x610] sm:$0xf0]  ;;  %v3273_v49 = vor.u32 %v4066_v29, %v3270_v30  ;;  %v3929_v6 = vld [vmem:[#allocation4 + $0xb4] sm:$0xf0]  ;;  %v2844_v7 = vld [vmem:[#allocation4 + $0x1a8] sm:$0xf] }
  0x8f   :  { %1843 = vmatpush.bf16.msrb.mxu2 %v3433_v12  ;;  %v3526_v38 = vld [vmem:[#allocation4 + $0x710] sm:$0xf0]  ;;  %v3401_v50 = vor.u32 %v4098_v33, %v3398_v35  ;;  %v3961_v9 = vld [vmem:[#allocation4 + $0x1b4] sm:$0xf0]  ;;  %v2972_v10 = vld [vmem:[#allocation4 + $0x2a8] sm:$0xf]  ;;  %v2717_v14 = vor.u32 %v3929_v6, %v2716_v5 }
  0x90   :  { %1856 = vmatpush.bf16.msrb.mxu3 %v3561_v16  ;;  %v3529_v53 = vor.u32 %v4130_v37, %v3526_v38  ;;  %v3993_v11 = vld [vmem:[#allocation4 + $0x2b4] sm:$0xf0]  ;;  %v3100_v12 = vld [vmem:[#allocation4 + $0x3a8] sm:$0xf]  ;;  %v2845_v15 = vor.u32 %v3961_v9, %v2844_v7 }
  0x91   :  { %1818 = vmatpush.bf16.msrb.mxu0 %v3161_v22  ;;  %v4025_v13 = vld [vmem:[#allocation4 + $0x3b4] sm:$0xf0]  ;;  %v2973_v16 = vor.u32 %v3993_v11, %v2972_v10  ;;  %v2700_v17 = vld [vmem:[#allocation4 + $0x88] sm:$0xf] }
  0x92   :  { %1831 = vmatpush.bf16.msrb.mxu1 %v3289_v27  ;;  %v3925_v18 = vld [vmem:[#allocation4 + $0x94] sm:$0xf0]  ;;  %v2828_v19 = vld [vmem:[#allocation4 + $0x188] sm:$0xf]  ;;  %v3101_v20 = vor.u32 %v4025_v13, %v3100_v12 }
  0x93   :  { %1844 = vmatpush.bf16.msrb.mxu2 %v3417_v28  ;;  %v3957_v21 = vld [vmem:[#allocation4 + $0x194] sm:$0xf0]  ;;  %v2956_v22 = vld [vmem:[#allocation4 + $0x288] sm:$0xf]  ;;  %v2701_v28 = vor.u32 %v3925_v18, %v2700_v17 }
  0x94   :  { %1857 = vmatpush.bf16.msrb.mxu3 %v3545_v34  ;;  %v3989_v23 = vld [vmem:[#allocation4 + $0x294] sm:$0xf0]  ;;  %v3084_v24 = vld [vmem:[#allocation4 + $0x388] sm:$0xf]  ;;  %v2829_v29 = vor.u32 %v3957_v21, %v2828_v19 }
  0x95   :  { %1819 = vmatpush.bf16.msrb.mxu0 %v3145_v45  ;;  %v4021_v27 = vld [vmem:[#allocation4 + $0x394] sm:$0xf0]  ;;  %v2957_v30 = vor.u32 %v3989_v23, %v2956_v22  ;;  %v2684_v33 = vld [vmem:[#allocation4 + $0x68] sm:$0xf] }
  0x96   :  { %1832 = vmatpush.bf16.msrb.mxu1 %v3273_v49  ;;  %v3921_v34 = vld [vmem:[#allocation4 + $0x74] sm:$0xf0]  ;;  %v2812_v35 = vld [vmem:[#allocation4 + $0x168] sm:$0xf]  ;;  %v3085_v37 = vor.u32 %v4021_v27, %v3084_v24 }
  0x97   :  { %1845 = vmatpush.bf16.msrb.mxu2 %v3401_v50  ;;  %v3953_v38 = vld [vmem:[#allocation4 + $0x174] sm:$0xf0]  ;;  %v2940_v41 = vld [vmem:[#allocation4 + $0x268] sm:$0xf]  ;;  %v2685_v46 = vor.u32 %v3921_v34, %v2684_v33 }
  0x98   :  { %1858 = vmatpush.bf16.msrb.mxu3 %v3529_v53  ;;  %1820 = vmatmul.bf16.vlgmr.msrb.gmra.mxu0 %v4401_v39  ;;  %v3985_v43 = vld [vmem:[#allocation4 + $0x274] sm:$0xf0]  ;;  %v3068_v44 = vld [vmem:[#allocation4 + $0x368] sm:$0xf]  ;;  %v2813_v47 = vor.u32 %v3953_v38, %v2812_v35 }
  0x99   :  { %1864 = vmatpush.bf16.msra.mxu0 %v2749_v54  ;;  %1833 = vmatmul.bf16.vlgmr.msrb.gmra.mxu1 %v4405_v42  ;;  %v4017_v45 = vld [vmem:[#allocation4 + $0x374] sm:$0xf0]  ;;  %v2941_v48 = vor.u32 %v3985_v43, %v2940_v41  ;;  %v2668_v49 = vld [vmem:[#allocation4 + $0x48] sm:$0xf] }
  0x9a   :  { %1877 = vmatpush.bf16.msra.mxu1 %v2877_v55  ;;  %1846 = vmatmul.bf16.vlgmr.msrb.gmra.mxu2 %v4399_v36  ;;  %v3917_v50 = vld [vmem:[#allocation4 + $0x54] sm:$0xf0]  ;;  %v2796_v51 = vld [vmem:[#allocation4 + $0x148] sm:$0xf]  ;;  %v3069_v52 = vor.u32 %v4017_v45, %v3068_v44 }
  0x9b   :  { %1890 = vmatpush.bf16.msra.mxu2 %v3005_v56  ;;  %1859 = vmatmul.bf16.vlgmr.msrb.gmra.mxu3 %v4403_v40  ;;  %v3949_v53 = vld [vmem:[#allocation4 + $0x154] sm:$0xf0]  ;;  %v2924_v54 = vld [vmem:[#allocation4 + $0x248] sm:$0xf]  ;;  %v2669_v58 = vor.u32 %v3917_v50, %v2668_v49 }
  0x9c   :  { %1903 = vmatpush.bf16.msra.mxu3 %v3133_v60  ;;  %v3981_v55 = vld [vmem:[#allocation4 + $0x254] sm:$0xf0]  ;;  %v3052_v56 = vld [vmem:[#allocation4 + $0x348] sm:$0xf]  ;;  %v2797_v59 = vor.u32 %v3949_v53, %v2796_v51 }
  0x9d   :  { %1865 = vmatpush.bf16.msra.mxu0 %v2733_v2  ;;  %v4013_v57 = vld [vmem:[#allocation4 + $0x354] sm:$0xf0]  ;;  %v2925_v60 = vor.u32 %v3981_v55, %v2924_v54  ;;  %v2652_v61 = vld [vmem:[#allocation4 + $0x28] sm:$0xf] }
  0x9e   :  { %1878 = vmatpush.bf16.msra.mxu1 %v2861_v3  ;;  %v3913_v62 = vld [vmem:[#allocation4 + $0x34] sm:$0xf0]  ;;  %v2780_v63 = vld [vmem:[#allocation4 + $0x128] sm:$0xf]  ;;  %v3053_v0 = vor.u32 %v4013_v57, %v3052_v56 }
  0x9f   :  { %1891 = vmatpush.bf16.msra.mxu2 %v2989_v4  ;;  %v3945_v1 = vld [vmem:[#allocation4 + $0x134] sm:$0xf0]  ;;  %v2908_v2 = vld [vmem:[#allocation4 + $0x228] sm:$0xf]  ;;  %v2653_v6 = vor.u32 %v3913_v62, %v2652_v61 }
  0xa0   :  { %1904 = vmatpush.bf16.msra.mxu3 %v3117_v8  ;;  %v3977_v3 = vld [vmem:[#allocation4 + $0x234] sm:$0xf0]  ;;  %v3036_v4 = vld [vmem:[#allocation4 + $0x328] sm:$0xf]  ;;  %v2781_v9 = vor.u32 %v3945_v1, %v2780_v63 }
  0xa1   :  { %1866 = vmatpush.bf16.msra.mxu0 %v2717_v14  ;;  %v4009_v5 = vld [vmem:[#allocation4 + $0x334] sm:$0xf0]  ;;  %v2636_v7 = vld [vmem:[#allocation4 + $0x8] sm:$0xf]  ;;  %v2909_v10 = vor.u32 %v3977_v3, %v2908_v2 }
  0xa2   :  { %1879 = vmatpush.bf16.msra.mxu1 %v2845_v15  ;;  %v3909_v8 = vld [vmem:[#allocation4 + $0x14] sm:$0xf0]  ;;  %v2764_v11 = vld [vmem:[#allocation4 + $0x108] sm:$0xf]  ;;  %v3037_v14 = vor.u32 %v4009_v5, %v3036_v4 }
  0xa3   :  { %1892 = vmatpush.bf16.msra.mxu2 %v2973_v16  ;;  %v3941_v12 = vld [vmem:[#allocation4 + $0x114] sm:$0xf0]  ;;  %v2892_v13 = vld [vmem:[#allocation4 + $0x208] sm:$0xf]  ;;  %v2637_v21 = vor.u32 %v3909_v8, %v2636_v7 }
  0xa4   :  { %1905 = vmatpush.bf16.msra.mxu3 %v3101_v20  ;;  %v3973_v15 = vld [vmem:[#allocation4 + $0x214] sm:$0xf0]  ;;  %v3020_v16 = vld [vmem:[#allocation4 + $0x308] sm:$0xf]  ;;  %v2765_v27 = vor.u32 %v3941_v12, %v2764_v11 }
  0xa5   :  { %1867 = vmatpush.bf16.msra.mxu0 %v2701_v28  ;;  %v4005_v17 = vld [vmem:[#allocation4 + $0x314] sm:$0xf0]  ;;  %v3260_v18 = vld [vmem:[#allocation4 + $0x4e8] sm:$0xf]  ;;  %v2893_v28 = vor.u32 %v3973_v15, %v2892_v13 }
  0xa6   :  { %1880 = vmatpush.bf16.msra.mxu1 %v2829_v29  ;;  %v4065_v19 = vld [vmem:[#allocation4 + $0x4f4] sm:$0xf0]  ;;  %v3388_v20 = vld [vmem:[#allocation4 + $0x5e8] sm:$0xf]  ;;  %v3021_v33 = vor.u32 %v4005_v17, %v3020_v16 }
  0xa7   :  { %1893 = vmatpush.bf16.msra.mxu2 %v2957_v30  ;;  %v4097_v22 = vld [vmem:[#allocation4 + $0x5f4] sm:$0xf0]  ;;  %v3516_v23 = vld [vmem:[#allocation4 + $0x6e8] sm:$0xf]  ;;  %v3261_v34 = vor.u32 %v4065_v19, %v3260_v18 }
  0xa8   :  { %1906 = vmatpush.bf16.msra.mxu3 %v3085_v37  ;;  %v4129_v24 = vld [vmem:[#allocation4 + $0x6f4] sm:$0xf0]  ;;  %v3644_v29 = vld [vmem:[#allocation4 + $0x7e8] sm:$0xf]  ;;  %v3389_v35 = vor.u32 %v4097_v22, %v3388_v20 }
  0xa9   :  { %1868 = vmatpush.bf16.msra.mxu0 %v2685_v46  ;;  %v4161_v30 = vld [vmem:[#allocation4 + $0x7f4] sm:$0xf0]  ;;  %v3517_v37 = vor.u32 %v4129_v24, %v3516_v23  ;;  %v3244_v38 = vld [vmem:[#allocation4 + $0x4c8] sm:$0xf] }
  0xaa   :  { %1881 = vmatpush.bf16.msra.mxu1 %v2813_v47  ;;  %v4061_v41 = vld [vmem:[#allocation4 + $0x4d4] sm:$0xf0]  ;;  %v3372_v43 = vld [vmem:[#allocation4 + $0x5c8] sm:$0xf]  ;;  %v3645_v44 = vor.u32 %v4161_v30, %v3644_v29  ;;  %v4423_v30 = vld [vmem:[#allocation7] sm:$0xf] }
  0xab   :  { %1894 = vmatpush.bf16.msra.mxu2 %v2941_v48  ;;  %v4093_v45 = vld [vmem:[#allocation4 + $0x5d4] sm:$0xf0]  ;;  %v3500_v46 = vld [vmem:[#allocation4 + $0x6c8] sm:$0xf]  ;;  %v3245_v50 = vor.u32 %v4061_v41, %v3244_v38 }
  0xac   :  { %1907 = vmatpush.bf16.msra.mxu3 %v3069_v52  ;;  %v4125_v47 = vld [vmem:[#allocation4 + $0x6d4] sm:$0xf0]  ;;  %v3628_v48 = vld [vmem:[#allocation4 + $0x7c8] sm:$0xf]  ;;  %v3373_v51 = vor.u32 %v4093_v45, %v3372_v43 }
  0xad   :  { %1869 = vmatpush.bf16.msra.mxu0 %v2669_v58  ;;  %v4157_v49 = vld [vmem:[#allocation4 + $0x7d4] sm:$0xf0]  ;;  %v3501_v52 = vor.u32 %v4125_v47, %v3500_v46  ;;  %v3228_v53 = vld [vmem:[#allocation4 + $0x4a8] sm:$0xf] }
  0xae   :  { %1882 = vmatpush.bf16.msra.mxu1 %v2797_v59  ;;  %v4057_v54 = vld [vmem:[#allocation4 + $0x4b4] sm:$0xf0]  ;;  %v3356_v55 = vld [vmem:[#allocation4 + $0x5a8] sm:$0xf]  ;;  %v3629_v56 = vor.u32 %v4157_v49, %v3628_v48 }
  0xaf   :  { %1895 = vmatpush.bf16.msra.mxu2 %v2925_v60  ;;  %v4089_v57 = vld [vmem:[#allocation4 + $0x5b4] sm:$0xf0]  ;;  %v3484_v58 = vld [vmem:[#allocation4 + $0x6a8] sm:$0xf]  ;;  %v3229_v62 = vor.u32 %v4057_v54, %v3228_v53 }
  0xb0   :  { %1908 = vmatpush.bf16.msra.mxu3 %v3053_v0  ;;  %v4121_v59 = vld [vmem:[#allocation4 + $0x6b4] sm:$0xf0]  ;;  %v3612_v60 = vld [vmem:[#allocation4 + $0x7a8] sm:$0xf]  ;;  %v3357_v63 = vor.u32 %v4089_v57, %v3356_v55 }
  0xb1   :  { %1870 = vmatpush.bf16.msra.mxu0 %v2653_v6  ;;  %v4153_v61 = vld [vmem:[#allocation4 + $0x7b4] sm:$0xf0]  ;;  %v3485_v0 = vor.u32 %v4121_v59, %v3484_v58  ;;  %v3212_v1 = vld [vmem:[#allocation4 + $0x488] sm:$0xf] }
  0xb2   :  { %1883 = vmatpush.bf16.msra.mxu1 %v2781_v9  ;;  %v4053_v2 = vld [vmem:[#allocation4 + $0x494] sm:$0xf0]  ;;  %v3340_v3 = vld [vmem:[#allocation4 + $0x588] sm:$0xf]  ;;  %v3613_v4 = vor.u32 %v4153_v61, %v3612_v60 }
  0xb3   :  { %1896 = vmatpush.bf16.msra.mxu2 %v2909_v10  ;;  %v4085_v5 = vld [vmem:[#allocation4 + $0x594] sm:$0xf0]  ;;  %v3468_v6 = vld [vmem:[#allocation4 + $0x688] sm:$0xf]  ;;  %v3213_v10 = vor.u32 %v4053_v2, %v3212_v1 }
  0xb4   :  { %1909 = vmatpush.bf16.msra.mxu3 %v3037_v14  ;;  %v4117_v7 = vld [vmem:[#allocation4 + $0x694] sm:$0xf0]  ;;  %v3596_v8 = vld [vmem:[#allocation4 + $0x788] sm:$0xf]  ;;  %v3341_v11 = vor.u32 %v4085_v5, %v3340_v3 }
  0xb5   :  { %1871 = vmatpush.bf16.msra.mxu0 %v2637_v21  ;;  %v4149_v9 = vld [vmem:[#allocation4 + $0x794] sm:$0xf0]  ;;  %v3469_v12 = vor.u32 %v4117_v7, %v3468_v6  ;;  %v3196_v13 = vld [vmem:[#allocation4 + $0x468] sm:$0xf] }
  0xb6   :  { %1884 = vmatpush.bf16.msra.mxu1 %v2765_v27  ;;  %v4049_v14 = vld [vmem:[#allocation4 + $0x474] sm:$0xf0]  ;;  %v3324_v15 = vld [vmem:[#allocation4 + $0x568] sm:$0xf]  ;;  %v3597_v16 = vor.u32 %v4149_v9, %v3596_v8  ;;  %v3935_v8 = vld [vmem:[#allocation4 + $0xec] sm:$0xf] }
  0xb7   :  { %1897 = vmatpush.bf16.msra.mxu2 %v2893_v28  ;;  %v4081_v17 = vld [vmem:[#allocation4 + $0x574] sm:$0xf0]  ;;  %v3452_v18 = vld [vmem:[#allocation4 + $0x668] sm:$0xf]  ;;  %v3197_v22 = vor.u32 %v4049_v14, %v3196_v13  ;;  %v2750_v9 = vld [vmem:[#allocation4 + $0xf8] sm:$0xf0] }
  0xb8   :  { %1910 = vmatpush.bf16.msra.mxu3 %v3021_v33  ;;  %1872 = vmatmul.bf16.vlgmr.msra.gmra.mxu0 %v4389_v26  ;;  %v4113_v19 = vld [vmem:[#allocation4 + $0x674] sm:$0xf0]  ;;  %v3580_v20 = vld [vmem:[#allocation4 + $0x768] sm:$0xf]  ;;  %v3325_v24 = vor.u32 %v4081_v17, %v3324_v15  ;;  %v2878_v13 = vld [vmem:[#allocation4 + $0x1f8] sm:$0xf0] }
  0xb9   :  { %1916 = vmatpush.bf16.msrb.mxu0 %v3261_v34  ;;  %1885 = vmatmul.bf16.vlgmr.msra.gmra.mxu1 %v4393_v32  ;;  %v4145_v21 = vld [vmem:[#allocation4 + $0x774] sm:$0xf0]  ;;  %v3180_v23 = vld [vmem:[#allocation4 + $0x448] sm:$0xf]  ;;  %v3453_v27 = vor.u32 %v4113_v19, %v3452_v18  ;;  %v3999_v14 = vld [vmem:[#allocation4 + $0x2ec] sm:$0xf] }
  0xba   :  { %1929 = vmatpush.bf16.msrb.mxu1 %v3389_v35  ;;  %1898 = vmatmul.bf16.vlgmr.msra.gmra.mxu2 %v4387_v25  ;;  %v4045_v28 = vld [vmem:[#allocation4 + $0x454] sm:$0xf0]  ;;  %v3308_v29 = vld [vmem:[#allocation4 + $0x548] sm:$0xf]  ;;  %v3581_v33 = vor.u32 %v4145_v21, %v3580_v20  ;;  %v3006_v15 = vld [vmem:[#allocation4 + $0x2f8] sm:$0xf0] }
  0xbb   :  { %1942 = vmatpush.bf16.msrb.mxu2 %v3517_v37  ;;  %1911 = vmatmul.bf16.vlgmr.msra.gmra.mxu3 %v4391_v31  ;;  %v4077_v34 = vld [vmem:[#allocation4 + $0x554] sm:$0xf0]  ;;  %v3436_v35 = vld [vmem:[#allocation4 + $0x648] sm:$0xf]  ;;  %v3181_v43 = vor.u32 %v4045_v28, %v3180_v23  ;;  %v4031_v19 = vld [vmem:[#allocation4 + $0x3ec] sm:$0xf] }
  0xbc   :  { %1955 = vmatpush.bf16.msrb.mxu3 %v3645_v44  ;;  %v4109_v37 = vld [vmem:[#allocation4 + $0x654] sm:$0xf0]  ;;  %v3564_v38 = vld [vmem:[#allocation4 + $0x748] sm:$0xf]  ;;  %v368_v44 = vperm.slane %v4423_v30, 0  ;;  %v3309_v45 = vor.u32 %v4077_v34, %v3308_v29 }
  0xbd   :  { %1917 = vmatpush.bf16.msrb.mxu0 %v3245_v50  ;;  %v4141_v41 = vld [vmem:[#allocation4 + $0x754] sm:$0xf0]  ;;  %v3437_v46 = vor.u32 %v4109_v37, %v3436_v35  ;;  %v3164_v47 = vld [vmem:[#allocation4 + $0x428] sm:$0xf]  ;;  %v3134_v20 = vld [vmem:[#allocation4 + $0x3f8] sm:$0xf0] }
  0xbe   :  { %1930 = vmatpush.bf16.msrb.mxu1 %v3373_v51  ;;  %v4041_v48 = vld [vmem:[#allocation4 + $0x434] sm:$0xf0]  ;;  %v3292_v49 = vld [vmem:[#allocation4 + $0x528] sm:$0xf]  ;;  %v3565_v50 = vor.u32 %v4141_v41, %v3564_v38  ;;  %v3931_v28 = vld [vmem:[#allocation4 + $0xcc] sm:$0xf]  ;;  %v3137_v37 = vor.u32 %v4031_v19, %v3134_v20 }
  0xbf   :  { %1943 = vmatpush.bf16.msrb.mxu2 %v3501_v52  ;;  %v4073_v51 = vld [vmem:[#allocation4 + $0x534] sm:$0xf0]  ;;  %v3420_v52 = vld [vmem:[#allocation4 + $0x628] sm:$0xf]  ;;  %v3165_v57 = vor.u32 %v4041_v48, %v3164_v47  ;;  %v2734_v29 = vld [vmem:[#allocation4 + $0xd8] sm:$0xf0] }
  0xc0   :  { %1956 = vmatpush.bf16.msrb.mxu3 %v3629_v56  ;;  %v4105_v53 = vld [vmem:[#allocation4 + $0x634] sm:$0xf0]  ;;  %v3548_v54 = vld [vmem:[#allocation4 + $0x728] sm:$0xf]  ;;  %v2862_v38 = vld [vmem:[#allocation4 + $0x1d8] sm:$0xf0]  ;;  %v2737_v47 = vor.u32 %v3931_v28, %v2734_v29 }
  0xc1   :  { %1918 = vmatpush.bf16.msrb.mxu0 %v3229_v62  ;;  %v4137_v55 = vld [vmem:[#allocation4 + $0x734] sm:$0xf0]  ;;  %v3148_v58 = vld [vmem:[#allocation4 + $0x408] sm:$0xf]  ;;  %v3293_v62 = vor.u32 %v4073_v51, %v3292_v49  ;;  %v3995_v41 = vld [vmem:[#allocation4 + $0x2cc] sm:$0xf] }
  0xc2   :  { %1931 = vmatpush.bf16.msrb.mxu1 %v3357_v63  ;;  %v4037_v59 = vld [vmem:[#allocation4 + $0x414] sm:$0xf0]  ;;  %v3421_v63 = vor.u32 %v4105_v53, %v3420_v52  ;;  %v3404_v2 = vld [vmem:[#allocation4 + $0x608] sm:$0xf]  ;;  %v3549_v3 = vor.u32 %v4137_v55, %v3548_v54  ;;  %v2718_v51 = vld [vmem:[#allocation4 + $0xb8] sm:$0xf0] }
  0xc3   :  { %1944 = vmatpush.bf16.msrb.mxu2 %v3485_v0  ;;  %v3276_v0 = vld [vmem:[#allocation4 + $0x508] sm:$0xf]  ;;  %v4069_v1 = vld [vmem:[#allocation4 + $0x514] sm:$0xf0]  ;;  %v3959_v52 = vld [vmem:[#allocation4 + $0x1ac] sm:$0xf] }
  0xc4   :  { %1957 = vmatpush.bf16.msrb.mxu3 %v3613_v4  ;;  %v4101_v4 = vld [vmem:[#allocation4 + $0x614] sm:$0xf0]  ;;  %v3532_v5 = vld [vmem:[#allocation4 + $0x708] sm:$0xf]  ;;  %v3277_v17 = vor.u32 %v4069_v1, %v3276_v0  ;;  %v2846_v55 = vld [vmem:[#allocation4 + $0x1b8] sm:$0xf0] }
  0xc5   :  { %1919 = vmatpush.bf16.msrb.mxu0 %v3213_v10  ;;  %v4133_v6 = vld [vmem:[#allocation4 + $0x714] sm:$0xf0]  ;;  %v3967_v10 = vld [vmem:[#allocation4 + $0x1ec] sm:$0xf]  ;;  %v3405_v18 = vor.u32 %v4101_v4, %v3404_v2  ;;  %v2702_v1 = vld [vmem:[#allocation4 + $0x98] sm:$0xf0] }
  0xc6   :  { %1932 = vmatpush.bf16.msrb.mxu1 %v3341_v11  ;;  %v3533_v21 = vor.u32 %v4133_v6, %v3532_v5  ;;  %v3923_v0 = vld [vmem:[#allocation4 + $0x8c] sm:$0xf]  ;;  %v2830_v4 = vld [vmem:[#allocation4 + $0x198] sm:$0xf0] }
  0xc7   :  { %1945 = vmatpush.bf16.msrb.mxu2 %v3469_v12  ;;  %v1665_v56 = vpop.f32.mrf.mxu0  ;;  %v3149_v12 = vor.u32 %v4037_v59, %v3148_v58  ;;  %v4023_v58 = vld [vmem:[#allocation4 + $0x3ac] sm:$0xf]  ;;  %v3102_v59 = vld [vmem:[#allocation4 + $0x3b8] sm:$0xf0] }
  0xc8   :  { %1958 = vmatpush.bf16.msrb.mxu3 %v3597_v16  ;;  %v1666_v60 = vadd.f32 %v1665_v56, %v368_v44  ;;  %v1678_v61 = vpop.f32.mrf.mxu1  ;;  %v3991_v56 = vld [vmem:[#allocation4 + $0x2ac] sm:$0xf]  ;;  %v2958_v6 = vld [vmem:[#allocation4 + $0x298] sm:$0xf0] }
  0xc9   :  { %1920 = vmatpush.bf16.msrb.mxu0 %v3197_v22  ;;  %v2753_v22 = vor.u32 %v3935_v8, %v2750_v9  ;;  %v3955_v2 = vld [vmem:[#allocation4 + $0x18c] sm:$0xf]  ;;  %v3086_v8 = vld [vmem:[#allocation4 + $0x398] sm:$0xf0]  ;;  %v2705_v9 = vor.u32 %v3923_v0, %v2702_v1 }
  0xca   :  { %1933 = vmatpush.bf16.msrb.mxu1 %v3325_v24  ;;  %v1679_v7 = vadd.f32 %v1678_v61, %v1666_v60  ;;  %v2881_v24 = vor.u32 %v3967_v10, %v2878_v13  ;;  %v3987_v5 = vld [vmem:[#allocation4 + $0x28c] sm:$0xf]  ;;  %v2814_v19 = vld [vmem:[#allocation4 + $0x178] sm:$0xf0] }
  0xcb   :  { %1946 = vmatpush.bf16.msrb.mxu2 %v3453_v27  ;;  %v3009_v27 = vor.u32 %v3999_v14, %v3006_v15  ;;  %v3919_v13 = vld [vmem:[#allocation4 + $0x6c] sm:$0xf]  ;;  %v2686_v14 = vld [vmem:[#allocation4 + $0x78] sm:$0xf0] }
  0xcc   :  { %1959 = vmatpush.bf16.msrb.mxu3 %v3581_v33  ;;  %v1691_v11 = vpop.f32.mrf.mxu2  ;;  %v3963_v33 = vld [vmem:[#allocation4 + $0x1cc] sm:$0xf] }
  0xcd   :  { %1921 = vmatpush.bf16.msrb.mxu0 %v3181_v43  ;;  %v1692_v16 = vadd.f32 %v1691_v11, %v1679_v7  ;;  %v1704_v23 = vpop.f32.mrf.mxu3  ;;  %v2990_v43 = vld [vmem:[#allocation4 + $0x2d8] sm:$0xf0]  ;;  %v2865_v48 = vor.u32 %v3963_v33, %v2862_v38  ;;  %v4019_v7 = vld [vmem:[#allocation4 + $0x38c] sm:$0xf]  ;;  %v2833_v11 = vor.u32 %v3955_v2, %v2830_v4 }
  0xce   :  { %1934 = vmatpush.bf16.msrb.mxu1 %v3309_v45  ;;  %v4027_v45 = vld [vmem:[#allocation4 + $0x3cc] sm:$0xf]  ;;  %v2993_v49 = vor.u32 %v3995_v41, %v2990_v43  ;;  %v2798_v41 = vld [vmem:[#allocation4 + $0x158] sm:$0xf0] }
  0xcf   :  { %1947 = vmatpush.bf16.msrb.mxu2 %v3437_v46  ;;  %v1705_v34 = vadd.f32 %v1704_v23, %v1692_v16  ;;  %v1667_v35 = vpop.f32.mrf.mxu0  ;;  %v3118_v46 = vld [vmem:[#allocation4 + $0x3d8] sm:$0xf0]  ;;  %v3951_v15 = vld [vmem:[#allocation4 + $0x16c] sm:$0xf] }
  0xd0   :  { %1960 = vmatpush.bf16.msrb.mxu3 %v3565_v50  ;;  %v1680_v44 = vpop.f32.mrf.mxu1  ;;  %v3927_v50 = vld [vmem:[#allocation4 + $0xac] sm:$0xf]  ;;  %v3121_v54 = vor.u32 %v4027_v45, %v3118_v46  ;;  %v3070_v23 = vld [vmem:[#allocation4 + $0x378] sm:$0xf0]  ;;  %v2817_v28 = vor.u32 %v3951_v15, %v2814_v19 }
  0xd1   :  { %1922 = vmatpush.bf16.msrb.mxu0 %v3165_v57  ;;  %v2974_v57 = vld [vmem:[#allocation4 + $0x2b8] sm:$0xf0]  ;;  %v2721_v60 = vor.u32 %v3927_v50, %v2718_v51  ;;  %v3983_v20 = vld [vmem:[#allocation4 + $0x26c] sm:$0xf] }
  0xd2   :  { %1935 = vmatpush.bf16.msrb.mxu1 %v3293_v62  ;;  %v2849_v62 = vor.u32 %v3959_v52, %v2846_v55  ;;  %v3915_v33 = vld [vmem:[#allocation4 + $0x4c] sm:$0xf]  ;;  %v2670_v35 = vld [vmem:[#allocation4 + $0x58] sm:$0xf0] }
  0xd3   :  { %1948 = vmatpush.bf16.msrb.mxu2 %v3421_v63  ;;  %v2977_v63 = vor.u32 %v3991_v56, %v2974_v57  ;;  %v3979_v43 = vld [vmem:[#allocation4 + $0x24c] sm:$0xf]  ;;  %v2926_v44 = vld [vmem:[#allocation4 + $0x258] sm:$0xf0] }
  0xd4   :  { %1961 = vmatpush.bf16.msrb.mxu3 %v3549_v3  ;;  %v1693_v53 = vpop.f32.mrf.mxu2  ;;  %v3105_v3 = vor.u32 %v4023_v58, %v3102_v59  ;;  %v2654_v55 = vld [vmem:[#allocation4 + $0x38] sm:$0xf0]  ;;  %v3943_v56 = vld [vmem:[#allocation4 + $0x12c] sm:$0xf] }
  0xd5   :  { %1923 = vmatpush.bf16.msrb.mxu0 %v3149_v12  ;;  %v1706_v61 = vpop.f32.mrf.mxu3  ;;  %v2961_v12 = vor.u32 %v3987_v5, %v2958_v6  ;;  %v2929_v53 = vor.u32 %v3979_v43, %v2926_v44  ;;  %v2782_v59 = vld [vmem:[#allocation4 + $0x138] sm:$0xf0]  ;;  %v3907_v1 = vld [vmem:[#allocation4 + $0xc] sm:$0xf] }
  0xd6   :  { %1936 = vmatpush.bf16.msrb.mxu1 %v3277_v17  ;;  %v2910_v61 = vld [vmem:[#allocation4 + $0x238] sm:$0xf0]  ;;  %v3939_v5 = vld [vmem:[#allocation4 + $0x10c] sm:$0xf] }
  0xd7   :  { %1949 = vmatpush.bf16.msrb.mxu2 %v3405_v18  ;;  %v3089_v18 = vor.u32 %v4019_v7, %v3086_v8  ;;  %v2638_v2 = vld [vmem:[#allocation4 + $0x18] sm:$0xf0]  ;;  %v3971_v7 = vld [vmem:[#allocation4 + $0x20c] sm:$0xf] }
  0xd8   :  { %1962 = vmatpush.bf16.msrb.mxu3 %v3533_v21  ;;  %1924 = vmatmul.bf16.vlgmr.msrb.gmra.mxu0 %v4401_v39  ;;  %v1717_v10 = vpop.f32.mrf.mxu0  ;;  %v2942_v21 = vld [vmem:[#allocation4 + $0x278] sm:$0xf0]  ;;  %v4127_v19 = vld [vmem:[#allocation4 + $0x6ec] sm:$0xf] }
  0xd9   :  { %1968 = vmatpush.bf16.msra.mxu0 %v2753_v22  ;;  %1937 = vmatmul.bf16.vlgmr.msrb.gmra.mxu1 %v4405_v42  ;;  %v1718_v16 = vadd.f32 %v1717_v10, %v1705_v34  ;;  %v1730_v17 = vpop.f32.mrf.mxu1  ;;  %v4015_v22 = vld [vmem:[#allocation4 + $0x36c] sm:$0xf]  ;;  %v2945_v29 = vor.u32 %v3983_v20, %v2942_v21  ;;  %v2766_v6 = vld [vmem:[#allocation4 + $0x118] sm:$0xf0] }
  0xda   :  { %1981 = vmatpush.bf16.msra.mxu1 %v2881_v24  ;;  %1950 = vmatmul.bf16.vlgmr.msrb.gmra.mxu2 %v4399_v36  ;;  %v3073_v34 = vor.u32 %v4015_v22, %v3070_v23  ;;  %v2894_v10 = vld [vmem:[#allocation4 + $0x218] sm:$0xf0]  ;;  %v2769_v21 = vor.u32 %v3939_v5, %v2766_v6  ;;  %v4159_v23 = vld [vmem:[#allocation4 + $0x7ec] sm:$0xf] }
  0xdb   :  { %1994 = vmatpush.bf16.msra.mxu2 %v3009_v27  ;;  %1963 = vmatmul.bf16.vlgmr.msrb.gmra.mxu3 %v4403_v40  ;;  %v1731_v24 = vadd.f32 %v1730_v17, %v1718_v16  ;;  %v2689_v27 = vor.u32 %v3919_v13, %v2686_v14  ;;  %v4063_v14 = vld [vmem:[#allocation4 + $0x4ec] sm:$0xf]  ;;  %v3262_v15 = vld [vmem:[#allocation4 + $0x4f8] sm:$0xf0]  ;;  %v2641_v17 = vor.u32 %v3907_v1, %v2638_v2 }
  0xdc   :  { %2007 = vmatpush.bf16.msra.mxu3 %v3137_v37  ;;  %v3947_v37 = vld [vmem:[#allocation4 + $0x14c] sm:$0xf]  ;;  %v3518_v20 = vld [vmem:[#allocation4 + $0x6f8] sm:$0xf0]  ;;  %v2897_v22 = vor.u32 %v3971_v7, %v2894_v10 }
  0xdd   :  { %1969 = vmatpush.bf16.msra.mxu0 %v2737_v47  ;;  %v1743_v38 = vpop.f32.mrf.mxu2  ;;  %v4011_v47 = vld [vmem:[#allocation4 + $0x34c] sm:$0xf]  ;;  %v2801_v52 = vor.u32 %v3947_v37, %v2798_v41  ;;  %v3246_v37 = vld [vmem:[#allocation4 + $0x4d8] sm:$0xf0] }
  0xde   :  { %1982 = vmatpush.bf16.msra.mxu1 %v2865_v48  ;;  %v1744_v45 = vadd.f32 %v1743_v38, %v1731_v24  ;;  %v3054_v48 = vld [vmem:[#allocation4 + $0x358] sm:$0xf0]  ;;  %v4095_v16 = vld [vmem:[#allocation4 + $0x5ec] sm:$0xf] }
  0xdf   :  { %1995 = vmatpush.bf16.msra.mxu2 %v2993_v49  ;;  %v2673_v49 = vor.u32 %v3915_v33, %v2670_v35  ;;  %v3057_v58 = vor.u32 %v4011_v47, %v3054_v48  ;;  %v3646_v24 = vld [vmem:[#allocation4 + $0x7f8] sm:$0xf0]  ;;  %v3521_v33 = vor.u32 %v4127_v19, %v3518_v20  ;;  %v4059_v35 = vld [vmem:[#allocation4 + $0x4cc] sm:$0xf] }
  0xe0   :  { %2008 = vmatpush.bf16.msra.mxu3 %v3121_v54  ;;  %v1756_v46 = vpop.f32.mrf.mxu3  ;;  %v1719_v51 = vpop.f32.mrf.mxu0  ;;  %v3911_v54 = vld [vmem:[#allocation4 + $0x2c] sm:$0xf]  ;;  %v3374_v41 = vld [vmem:[#allocation4 + $0x5d8] sm:$0xf0]  ;;  %v3249_v47 = vor.u32 %v4059_v35, %v3246_v37 }
  0xe1   :  { %1970 = vmatpush.bf16.msra.mxu0 %v2721_v60  ;;  %v4430_v50 = vadd.f32 %v1756_v46, %v1744_v45  ;;  %v1732_v57 = vpop.f32.mrf.mxu1  ;;  %v3975_v60 = vld [vmem:[#allocation4 + $0x22c] sm:$0xf]  ;;  %v2657_v0 = vor.u32 %v3911_v54, %v2654_v55  ;;  %v3502_v44 = vld [vmem:[#allocation4 + $0x6d8] sm:$0xf0] }
  0xe2   :  { %1983 = vmatpush.bf16.msra.mxu1 %v2849_v62  ;;  %v4007_v62 = vld [vmem:[#allocation4 + $0x32c] sm:$0xf]  ;;  %v2913_v4 = vor.u32 %v3975_v60, %v2910_v61  ;;  %v3630_v46 = vld [vmem:[#allocation4 + $0x7d8] sm:$0xf0] }
  0xe3   :  { %1996 = vmatpush.bf16.msra.mxu2 %v2977_v63  ;;  %v3038_v63 = vld [vmem:[#allocation4 + $0x338] sm:$0xf0]  ;;  %v4091_v38 = vld [vmem:[#allocation4 + $0x5cc] sm:$0xf] }
  0xe4   :  { %2009 = vmatpush.bf16.msra.mxu3 %v3105_v3  ;;  %v2785_v3 = vor.u32 %v3943_v56, %v2782_v59  ;;  %v4123_v43 = vld [vmem:[#allocation4 + $0x6cc] sm:$0xf]  ;;  %v3377_v48 = vor.u32 %v4091_v38, %v3374_v41  ;;  %v3358_v55 = vld [vmem:[#allocation4 + $0x5b8] sm:$0xf0] }
  0xe5   :  { %1971 = vmatpush.bf16.msra.mxu0 %v2705_v9  ;;  %v1745_v8 = vpop.f32.mrf.mxu2  ;;  %v3041_v9 = vor.u32 %v4007_v62, %v3038_v63  ;;  %v4155_v45 = vld [vmem:[#allocation4 + $0x7cc] sm:$0xf]  ;;  %v3486_v57 = vld [vmem:[#allocation4 + $0x6b8] sm:$0xf0] }
  0xe6   :  { %1984 = vmatpush.bf16.msra.mxu1 %v2833_v11  ;;  %v4003_v11 = vld [vmem:[#allocation4 + $0x30c] sm:$0xf]  ;;  %v3633_v54 = vor.u32 %v4155_v45, %v3630_v46  ;;  %v3614_v59 = vld [vmem:[#allocation4 + $0x7b8] sm:$0xf0] }
  0xe7   :  { %1997 = vmatpush.bf16.msra.mxu2 %v2961_v12  ;;  %v3022_v12 = vld [vmem:[#allocation4 + $0x318] sm:$0xf0]  ;;  %v4055_v51 = vld [vmem:[#allocation4 + $0x4ac] sm:$0xf] }
  0xe8   :  { %2010 = vmatpush.bf16.msra.mxu3 %v3089_v18  ;;  %v1758_v13 = vpop.f32.mrf.mxu3  ;;  %v3390_v18 = vld [vmem:[#allocation4 + $0x5f8] sm:$0xf0]  ;;  %v4119_v56 = vld [vmem:[#allocation4 + $0x6ac] sm:$0xf] }
  0xe9   :  { %1972 = vmatpush.bf16.msra.mxu0 %v2689_v27  ;;  %v3025_v27 = vor.u32 %v4003_v11, %v3022_v12  ;;  %v3489_v62 = vor.u32 %v4119_v56, %v3486_v57  ;;  %v4051_v63 = vld [vmem:[#allocation4 + $0x48c] sm:$0xf]  ;;  %v3342_v2 = vld [vmem:[#allocation4 + $0x598] sm:$0xf0]  ;;  %v369_v56 = vperm.slane %v4423_v30, 1 }
  0xea   :  { %1985 = vmatpush.bf16.msra.mxu1 %v2817_v28  ;;  %v3265_v28 = vor.u32 %v4063_v14, %v3262_v15  ;;  %v4147_v5 = vld [vmem:[#allocation4 + $0x78c] sm:$0xf]  ;;  %v3326_v13 = vld [vmem:[#allocation4 + $0x578] sm:$0xf0] }
  0xeb   :  { %1998 = vmatpush.bf16.msra.mxu2 %v2945_v29  ;;  %v3393_v29 = vor.u32 %v4095_v16, %v3390_v18  ;;  %v4047_v8 = vld [vmem:[#allocation4 + $0x46c] sm:$0xf]  ;;  %v3454_v15 = vld [vmem:[#allocation4 + $0x678] sm:$0xf0] }
  0xec   :  { %2011 = vmatpush.bf16.msra.mxu3 %v3073_v34  ;;  %v3649_v34 = vor.u32 %v4159_v23, %v3646_v24  ;;  %v4079_v10 = vld [vmem:[#allocation4 + $0x56c] sm:$0xf]  ;;  %v3566_v38 = vld [vmem:[#allocation4 + $0x758] sm:$0xf0] }
  0xed   :  { %1973 = vmatpush.bf16.msra.mxu0 %v2673_v49  ;;  %v3505_v49 = vor.u32 %v4123_v43, %v3502_v44  ;;  %v4111_v14 = vld [vmem:[#allocation4 + $0x66c] sm:$0xf]  ;;  %v3329_v19 = vor.u32 %v4079_v10, %v3326_v13  ;;  %v3166_v46 = vld [vmem:[#allocation4 + $0x438] sm:$0xf0] }
  0xee   :  { %1986 = vmatpush.bf16.msra.mxu1 %v2801_v52  ;;  %v3230_v52 = vld [vmem:[#allocation4 + $0x4b8] sm:$0xf0]  ;;  %v4143_v16 = vld [vmem:[#allocation4 + $0x76c] sm:$0xf]  ;;  %v3457_v20 = vor.u32 %v4111_v14, %v3454_v15 }
  0xef   :  { %1999 = vmatpush.bf16.msra.mxu2 %v2929_v53  ;;  %v4087_v53 = vld [vmem:[#allocation4 + $0x5ac] sm:$0xf]  ;;  %v3233_v60 = vor.u32 %v4055_v51, %v3230_v52  ;;  %v3294_v51 = vld [vmem:[#allocation4 + $0x538] sm:$0xf0] }
  0xf0   :  { %2012 = vmatpush.bf16.msra.mxu3 %v3057_v58  ;;  %v4151_v58 = vld [vmem:[#allocation4 + $0x7ac] sm:$0xf]  ;;  %v3361_v61 = vor.u32 %v4087_v53, %v3358_v55  ;;  %v3422_v53 = vld [vmem:[#allocation4 + $0x638] sm:$0xf0] }
  0xf1   :  { %1974 = vmatpush.bf16.msra.mxu0 %v2657_v0  ;;  %v3214_v0 = vld [vmem:[#allocation4 + $0x498] sm:$0xf0]  ;;  %v3617_v1 = vor.u32 %v4151_v58, %v3614_v59  ;;  %v4075_v23 = vld [vmem:[#allocation4 + $0x54c] sm:$0xf] }
  0xf2   :  { %1987 = vmatpush.bf16.msra.mxu1 %v2785_v3  ;;  %v4115_v3 = vld [vmem:[#allocation4 + $0x68c] sm:$0xf]  ;;  %v3550_v55 = vld [vmem:[#allocation4 + $0x738] sm:$0xf0] }
  0xf3   :  { %2000 = vmatpush.bf16.msra.mxu2 %v2913_v4  ;;  %v3470_v4 = vld [vmem:[#allocation4 + $0x698] sm:$0xf0]  ;;  %v4139_v37 = vld [vmem:[#allocation4 + $0x74c] sm:$0xf] }
  0xf4   :  { %2013 = vmatpush.bf16.msra.mxu3 %v3041_v9  ;;  %v3473_v7 = vor.u32 %v4115_v3, %v3470_v4  ;;  %v3198_v9 = vld [vmem:[#allocation4 + $0x478] sm:$0xf0]  ;;  %v4039_v45 = vld [vmem:[#allocation4 + $0x42c] sm:$0xf] }
  0xf5   :  { %1975 = vmatpush.bf16.msra.mxu0 %v2641_v17  ;;  %v4436_v6 = vpop.f32.mrf.mxu0  ;;  %v3582_v17 = vld [vmem:[#allocation4 + $0x778] sm:$0xf0]  ;;  %v3201_v18 = vor.u32 %v4047_v8, %v3198_v9  ;;  %v4103_v52 = vld [vmem:[#allocation4 + $0x62c] sm:$0xf]  ;;  %v3169_v57 = vor.u32 %v4039_v45, %v3166_v46  ;;  %v4193_v8 = vld [vmem:[#allocation6 + $0xf4] sm:$0xf0] }
  0xf6   :  { %1988 = vmatpush.bf16.msra.mxu1 %v2769_v21  ;;  %v4438_v11 = vpop.f32.mrf.mxu1  ;;  %v4043_v21 = vld [vmem:[#allocation4 + $0x44c] sm:$0xf]  ;;  %v1770_v30 = vadd.f32 %v4436_v6, %v369_v56  ;;  %v3764_v6 = vld [vmem:[#allocation6 + $0xe0] sm:$0xf]  ;;  %v3676_v45 = vld [vmem:[#allocation6 + $0x30] sm:$0xf] }
  0xf7   :  { %2001 = vmatpush.bf16.msra.mxu2 %v2897_v22  ;;  %v3182_v22 = vld [vmem:[#allocation4 + $0x458] sm:$0xf0]  ;;  %v4035_v58 = vld [vmem:[#allocation4 + $0x40c] sm:$0xf]  ;;  %v3668_v56 = vld [vmem:[#allocation6 + $0x20] sm:$0xf] }
  0xf8   :  { %2014 = vmatpush.bf16.msra.mxu3 %v3025_v27  ;;  %1976 = vmatmul.bf16.vlgmr.msra.gmra.mxu0 %v4389_v26  ;;  %v3598_v26 = vld [vmem:[#allocation4 + $0x798] sm:$0xf0]  ;;  %v3585_v27 = vor.u32 %v4143_v16, %v3582_v17  ;;  %v4131_v3 = vld [vmem:[#allocation4 + $0x70c] sm:$0xf]  ;;  %v1783_v15 = vadd.f32 %v4438_v11, %v1770_v30  ;;  %v3700_v16 = vld [vmem:[#allocation6 + $0x60] sm:$0xf] }
  0xf9   :  { %2020 = vmatpush.bf16.msrb.mxu0 %v3265_v28  ;;  %1989 = vmatmul.bf16.vlgmr.msra.gmra.mxu1 %v4393_v32  ;;  %v3601_v12 = vor.u32 %v4147_v5, %v3598_v26  ;;  %v3310_v28 = vld [vmem:[#allocation4 + $0x558] sm:$0xf0]  ;;  %v3708_v26 = vld [vmem:[#allocation6 + $0x70] sm:$0xf]  ;;  %v4175_v17 = vld [vmem:[#allocation6 + $0x64] sm:$0xf0] }
  0xfa   :  { %2033 = vmatpush.bf16.msrb.mxu1 %v3393_v29  ;;  %2002 = vmatmul.bf16.vlgmr.msra.gmra.mxu2 %v4387_v25  ;;  %v4083_v25 = vld [vmem:[#allocation4 + $0x58c] sm:$0xf]  ;;  %v3313_v43 = vor.u32 %v4075_v23, %v3310_v28  ;;  %v3534_v5 = vld [vmem:[#allocation4 + $0x718] sm:$0xf0]  ;;  %v4173_v23 = vld [vmem:[#allocation6 + $0x54] sm:$0xf0] }
  0xfb   :  { %2046 = vmatpush.bf16.msrb.mxu2 %v3521_v33  ;;  %2015 = vmatmul.bf16.vlgmr.msra.gmra.mxu3 %v4391_v31  ;;  %v3217_v31 = vor.u32 %v4051_v63, %v3214_v0  ;;  %v3345_v32 = vor.u32 %v4083_v25, %v3342_v2  ;;  %v4107_v29 = vld [vmem:[#allocation4 + $0x64c] sm:$0xf]  ;;  %v3438_v33 = vld [vmem:[#allocation4 + $0x658] sm:$0xf0]  ;;  %v3756_v11 = vld [vmem:[#allocation6 + $0xd0] sm:$0xf] }
  0xfc   :  { %2059 = vmatpush.bf16.msrb.mxu3 %v3649_v34  ;;  %v3185_v34 = vor.u32 %v4043_v21, %v3182_v22  ;;  %v3441_v44 = vor.u32 %v4107_v29, %v3438_v33  ;;  %v3278_v63 = vld [vmem:[#allocation4 + $0x518] sm:$0xf0]  ;;  %v3692_v22 = vld [vmem:[#allocation6 + $0x50] sm:$0xf] }
  0xfd   :  { %2021 = vmatpush.bf16.msrb.mxu0 %v3249_v47  ;;  %v4440_v24 = vpop.f32.mrf.mxu2  ;;  %v1771_v41 = vpop.f32.mrf.mxu0  ;;  %v4071_v47 = vld [vmem:[#allocation4 + $0x52c] sm:$0xf]  ;;  %v3406_v2 = vld [vmem:[#allocation4 + $0x618] sm:$0xf0]  ;;  %v3693_v28 = vor.u32 %v4173_v23, %v3692_v22  ;;  %v4192_v22 = vld [vmem:[#allocation6 + $0xf4] sm:$0xf] }
  0xfe   :  { %2034 = vmatpush.bf16.msrb.mxu1 %v3377_v48  ;;  %v4442_v35 = vpop.f32.mrf.mxu3  ;;  %v1784_v48 = vpop.f32.mrf.mxu1  ;;  %v3297_v59 = vor.u32 %v4071_v47, %v3294_v51  ;;  %v3774_v23 = vld [vmem:[#allocation6 + $0xf8] sm:$0xf0] }
  0xff   :  { %2047 = vmatpush.bf16.msrb.mxu2 %v3505_v49  ;;  %v3569_v49 = vor.u32 %v4139_v37, %v3566_v38  ;;  %v4171_v37 = vld [vmem:[#allocation6 + $0x44] sm:$0xf0]  ;;  %v3740_v48 = vld [vmem:[#allocation6 + $0xb0] sm:$0xf] }
 0x100   :  { %2060 = vmatpush.bf16.msrb.mxu3 %v3633_v54  ;;  %v4135_v54 = vld [vmem:[#allocation4 + $0x72c] sm:$0xf]  ;;  %v4187_v38 = vld [vmem:[#allocation6 + $0xc4] sm:$0xf0] }
 0x101   :  { %2022 = vmatpush.bf16.msrb.mxu0 %v3233_v60  ;;  %v3425_v60 = vor.u32 %v4103_v52, %v3422_v53  ;;  %v3553_v25 = vor.u32 %v4135_v54, %v3550_v55  ;;  %v3828_v52 = vld [vmem:[#allocation6 + $0x160] sm:$0xf]  ;;  %v4207_v53 = vld [vmem:[#allocation6 + $0x164] sm:$0xf0] }
 0x102   :  { %2035 = vmatpush.bf16.msrb.mxu1 %v3361_v61  ;;  %v3150_v61 = vld [vmem:[#allocation4 + $0x418] sm:$0xf0] }
 0x103   :  { %2048 = vmatpush.bf16.msrb.mxu2 %v3489_v62  ;;  %v4067_v62 = vld [vmem:[#allocation4 + $0x50c] sm:$0xf] }
 0x104   :  { %2061 = vmatpush.bf16.msrb.mxu3 %v3617_v1  ;;  %v4099_v1 = vld [vmem:[#allocation4 + $0x60c] sm:$0xf]  ;;  %v3281_v9 = vor.u32 %v4067_v62, %v3278_v63 }
 0x105   :  { %2023 = vmatpush.bf16.msrb.mxu0 %v3217_v31  ;;  %v1797_v0 = vpop.f32.mrf.mxu2  ;;  %v4177_v31 = vld [vmem:[#allocation6 + $0x74] sm:$0xf0]  ;;  %v3409_v10 = vor.u32 %v4099_v1, %v3406_v2  ;;  %v3820_v1 = vld [vmem:[#allocation6 + $0x150] sm:$0xf] }
 0x106   :  { %2036 = vmatpush.bf16.msrb.mxu1 %v3345_v32  ;;  %v1810_v4 = vpop.f32.mrf.mxu3  ;;  %v3153_v32 = vor.u32 %v4035_v58, %v3150_v61  ;;  %v3709_v13 = vor.u32 %v4177_v31, %v3708_v26  ;;  %v3829_v58 = vor.u32 %v4207_v53, %v3828_v52  ;;  %v4183_v61 = vld [vmem:[#allocation6 + $0xa4] sm:$0xf0]  ;;  %v4205_v2 = vld [vmem:[#allocation6 + $0x154] sm:$0xf0]  ;;  %v3724_v31 = vld [vmem:[#allocation6 + $0x90] sm:$0xf] }
 0x107   :  { %2049 = vmatpush.bf16.msrb.mxu2 %v3473_v7  ;;  %v3772_v7 = vld [vmem:[#allocation6 + $0xf0] sm:$0xf]  ;;  %v3821_v26 = vor.u32 %v4205_v2, %v3820_v1  ;;  %v4188_v52 = vld [vmem:[#allocation6 + $0xd4] sm:$0xf]  ;;  %v3758_v53 = vld [vmem:[#allocation6 + $0xd8] sm:$0xf0] }
 0x108   :  { %2062 = vmatpush.bf16.msrb.mxu3 %v3601_v12  ;;  %v3537_v12 = vor.u32 %v4131_v3, %v3534_v5  ;;  %v3773_v14 = vor.u32 %v4193_v8, %v3772_v7  ;;  %v3660_v4 = vld [vmem:[#allocation6 + $0x10] sm:$0xf]  ;;  %v4165_v5 = vld [vmem:[#allocation6 + $0x14] sm:$0xf0]  ;;  %v2072_v7 = vmul.f32 0.2, %v4430_v50 }
 0x109   :  { %2024 = vmatpush.bf16.msrb.mxu0 %v3201_v18  ;;  %v4191_v18 = vld [vmem:[#allocation6 + $0xe4] sm:$0xf0]  ;;  %v3838_v1 = vld [vmem:[#allocation6 + $0x178] sm:$0xf0] }
 0x10a   :  { %2037 = vmatpush.bf16.msrb.mxu1 %v3329_v19  ;;  %v3701_v19 = vor.u32 %v4175_v17, %v3700_v16  ;;  %v3765_v21 = vor.u32 %v4191_v18, %v3764_v6  ;;  %v3716_v16 = vld [vmem:[#allocation6 + $0x80] sm:$0xf]  ;;  %v4179_v18 = vld [vmem:[#allocation6 + $0x84] sm:$0xf0] }
 0x10b   :  { %2050 = vmatpush.bf16.msrb.mxu2 %v3457_v20  ;;  %v1796_v20 = vadd.f32 %v4440_v24, %v1783_v15  ;;  %v3748_v24 = vld [vmem:[#allocation6 + $0xc0] sm:$0xf]  ;;  %v4163_v15 = vld [vmem:[#allocation6 + $0x4] sm:$0xf0] }
 0x10c   :  { %2063 = vmatpush.bf16.msrb.mxu3 %v3585_v27  ;;  %v4189_v27 = vld [vmem:[#allocation6 + $0xd4] sm:$0xf0] }
 0x10d   :  { %2025 = vmatpush.bf16.msrb.mxu0 %v3185_v34  ;;  %v1809_v29 = vadd.f32 %v4442_v35, %v1796_v20  ;;  %v3757_v33 = vor.u32 %v4189_v27, %v3756_v11  ;;  %v3710_v20 = vld [vmem:[#allocation6 + $0x78] sm:$0xf0] }
 0x10e   :  { %2038 = vmatpush.bf16.msrb.mxu1 %v3313_v43  ;;  %v4209_v43 = vld [vmem:[#allocation6 + $0x174] sm:$0xf0] }
 0x10f   :  { %2051 = vmatpush.bf16.msrb.mxu2 %v3441_v44 }
 0x110   :  { %2064 = vmatpush.bf16.msrb.mxu3 %v3569_v49  ;;  %v4185_v49 = vld [vmem:[#allocation6 + $0xb4] sm:$0xf0] }
 0x111   :  { %2026 = vmatpush.bf16.msrb.mxu0 %v3169_v57  ;;  %v3741_v54 = vor.u32 %v4185_v49, %v3740_v48  ;;  %v4167_v57 = vld [vmem:[#allocation6 + $0x24] sm:$0xf0]  ;;  %v4197_v48 = vld [vmem:[#allocation6 + $0x114] sm:$0xf0] }
 0x112   :  { %2039 = vmatpush.bf16.msrb.mxu1 %v3297_v59  ;;  %v3669_v63 = vor.u32 %v4167_v57, %v3668_v56  ;;  %v4195_v56 = vld [vmem:[#allocation6 + $0x104] sm:$0xf0] }
 0x113   :  { %2052 = vmatpush.bf16.msrb.mxu2 %v3425_v60  ;;  %v3732_v60 = vld [vmem:[#allocation6 + $0xa0] sm:$0xf] }
 0x114   :  { %2065 = vmatpush.bf16.msrb.mxu3 %v3553_v25  ;;  %v3733_v3 = vor.u32 %v4183_v61, %v3732_v60  ;;  %v3686_v60 = vld [vmem:[#allocation6 + $0x48] sm:$0xf0]  ;;  %v4186_v61 = vld [vmem:[#allocation6 + $0xc4] sm:$0xf] }
 0x115   :  { %2027 = vmatpush.bf16.msrb.mxu0 %v3153_v32  ;;  %v1821_v41 = vpop.f32.mrf.mxu0  ;;  %v4181_v32 = vld [vmem:[#allocation6 + $0x94] sm:$0xf0] }
 0x116   :  { %2040 = vmatpush.bf16.msrb.mxu1 %v3281_v9  ;;  %v1822_v44 = vadd.f32 %v1821_v41, %v1809_v29  ;;  %v1834_v46 = vpop.f32.mrf.mxu1  ;;  %v3661_v9 = vor.u32 %v4165_v5, %v3660_v4  ;;  %v4201_v29 = vld [vmem:[#allocation6 + $0x134] sm:$0xf0]  ;;  %v3702_v41 = vld [vmem:[#allocation6 + $0x68] sm:$0xf0]  ;;  %v3678_v4 = vld [vmem:[#allocation6 + $0x38] sm:$0xf0] }
 0x117   :  { %2053 = vmatpush.bf16.msrb.mxu2 %v3409_v10  ;;  %v3812_v10 = vld [vmem:[#allocation6 + $0x140] sm:$0xf] }
 0x118   :  { %2066 = vmatpush.bf16.msrb.mxu3 %v3537_v12  ;;  %2028 = vmatmul.bf16.vlgmr.msrb.gmra.mxu0 %v4401_v39  ;;  %v3684_v39 = vld [vmem:[#allocation6 + $0x40] sm:$0xf]  ;;  %v1835_v35 = vadd.f32 %v1834_v46, %v1822_v44  ;;  %v4203_v12 = vld [vmem:[#allocation6 + $0x144] sm:$0xf0] }
 0x119   :  { %2473 = vmatpush.bf16.msra.mxu0 %v3709_v13  ;;  %2041 = vmatmul.bf16.vlgmr.msrb.gmra.mxu1 %v4405_v42  ;;  %v3685_v34 = vor.u32 %v4171_v37, %v3684_v39  ;;  %v3836_v42 = vld [vmem:[#allocation6 + $0x170] sm:$0xf]  ;;  %v3725_v13 = vor.u32 %v4181_v32, %v3724_v31  ;;  %v3813_v6 = vor.u32 %v4203_v12, %v3812_v10  ;;  %v3796_v44 = vld [vmem:[#allocation6 + $0x120] sm:$0xf]  ;;  %v3742_v31 = vld [vmem:[#allocation6 + $0xb8] sm:$0xf0] }
 0x11a   :  { %2486 = vmatpush.bf16.msra.mxu1 %v3773_v14  ;;  %2054 = vmatmul.bf16.vlgmr.msrb.gmra.mxu2 %v4399_v36  ;;  %v3749_v36 = vor.u32 %v4187_v38, %v3748_v24  ;;  %v3837_v47 = vor.u32 %v4209_v43, %v3836_v42  ;;  %v3652_v14 = vld [vmem:[#allocation6] sm:$0xf]  ;;  %v3717_v39 = vor.u32 %v4179_v18, %v3716_v16  ;;  %v4190_v42 = vld [vmem:[#allocation6 + $0xe4] sm:$0xf]  ;;  %v3766_v43 = vld [vmem:[#allocation6 + $0xe8] sm:$0xf0] }
 0x11b   :  { %2067 = vmatmul.bf16.vlgmr.msrb.gmra.mxu3 %v4403_v40  ;;  %v4169_v40 = vld [vmem:[#allocation6 + $0x34] sm:$0xf0]  ;;  %v3653_v27 = vor.u32 %v4163_v15, %v3652_v14  ;;  %v3777_v38 = vor.u32 %v4192_v22, %v3774_v23  ;;  %v3769_v49 = vor.u32 %v4190_v42, %v3766_v43  ;;  %v4166_v12 = vld [vmem:[#allocation6 + $0x24] sm:$0xf]  ;;  %v3734_v16 = vld [vmem:[#allocation6 + $0xa8] sm:$0xf0] }
 0x11c   :  { %2499 = vmatpush.bf16.msra.mxu2 %v3837_v47  ;;  %v3677_v51 = vor.u32 %v4169_v40, %v3676_v45  ;;  %v4199_v45 = vld [vmem:[#allocation6 + $0x124] sm:$0xf0]  ;;  %v3788_v47 = vld [vmem:[#allocation6 + $0x110] sm:$0xf]  ;;  %v4182_v15 = vld [vmem:[#allocation6 + $0xa4] sm:$0xf] }
 0x11d   :  { %2474 = vmatpush.bf16.msra.mxu0 %v3701_v19  ;;  %v1847_v55 = vpop.f32.mrf.mxu2  ;;  %v1823_v25 = vpop.f32.mrf.mxu0  ;;  %v4176_v19 = vld [vmem:[#allocation6 + $0x74] sm:$0xf]  ;;  %v3797_v46 = vor.u32 %v4199_v45, %v3796_v44  ;;  %v3662_v23 = vld [vmem:[#allocation6 + $0x18] sm:$0xf0]  ;;  %v4162_v42 = vld [vmem:[#allocation6 + $0x4] sm:$0xf] }
 0x11e   :  { %2487 = vmatpush.bf16.msra.mxu1 %v3765_v21  ;;  %v1848_v59 = vadd.f32 %v1847_v55, %v1835_v35  ;;  %v1860_v62 = vpop.f32.mrf.mxu3  ;;  %v1836_v30 = vpop.f32.mrf.mxu1  ;;  %v3713_v37 = vor.u32 %v4176_v19, %v3710_v20  ;;  %v4172_v35 = vld [vmem:[#allocation6 + $0x54] sm:$0xf]  ;;  %v3780_v55 = vld [vmem:[#allocation6 + $0x100] sm:$0xf]  ;;  %v3822_v20 = vld [vmem:[#allocation6 + $0x158] sm:$0xf0] }
 0x11f   :  { %v4208_v25 = vld [vmem:[#allocation6 + $0x174] sm:$0xf]  ;;  %v3654_v43 = vld [vmem:[#allocation6 + $0x8] sm:$0xf0]  ;;  %v4178_v45 = vld [vmem:[#allocation6 + $0x84] sm:$0xf] }
 0x120   :  { %2500 = vmatpush.bf16.msra.mxu2 %v3829_v58  ;;  %v1861_v0 = vadd.f32 %v1860_v62, %v1848_v59  ;;  %v3761_v58 = vor.u32 %v4188_v52, %v3758_v53  ;;  %v4170_v59 = vld [vmem:[#allocation6 + $0x44] sm:$0xf]  ;;  %v3750_v62 = vld [vmem:[#allocation6 + $0xc8] sm:$0xf0]  ;;  %v3841_v30 = vor.u32 %v4208_v25, %v3838_v1  ;;  %v4204_v19 = vld [vmem:[#allocation6 + $0x154] sm:$0xf] }
 0x121   :  { %2475 = vmatpush.bf16.msra.mxu0 %v3693_v28  ;;  %v3804_v28 = vld [vmem:[#allocation6 + $0x130] sm:$0xf]  ;;  %v3753_v2 = vor.u32 %v4186_v61, %v3750_v62  ;;  %v4164_v22 = vld [vmem:[#allocation6 + $0x14] sm:$0xf]  ;;  %v4198_v53 = vld [vmem:[#allocation6 + $0x124] sm:$0xf] }
 0x122   :  { %2488 = vmatpush.bf16.msra.mxu1 %v3757_v33  ;;  %v2073_v8 = vmul.f32 0.2, %v1861_v0  ;;  %v2076_v33 = vmax.f32 %v4430_v50, %v2072_v7  ;;  %v3805_v24 = vor.u32 %v4201_v29, %v3804_v28  ;;  %v4180_v28 = vld [vmem:[#allocation6 + $0x94] sm:$0xf]  ;;  %v3726_v29 = vld [vmem:[#allocation6 + $0x98] sm:$0xf0] }
 0x123   :  { %v4196_v61 = vld [vmem:[#allocation6 + $0x114] sm:$0xf]  ;;  %v3790_v62 = vld [vmem:[#allocation6 + $0x118] sm:$0xf0]  ;;  %v4194_v25 = vld [vmem:[#allocation6 + $0x104] sm:$0xf] }
 0x124   :  { %2501 = vmatpush.bf16.msra.mxu2 %v3821_v26  ;;  %v2077_v11 = vmax.f32 %v1861_v0, %v2073_v8  ;;  %v4457_v40 = vpack.c.bf16 %v2076_v33, %v2076_v33  ;;  %v3689_v0 = vor.u32 %v4170_v59, %v3686_v60  ;;  %v4184_v26 = vld [vmem:[#allocation6 + $0xb4] sm:$0xf]  ;;  %v4206_v8 = vld [vmem:[#allocation6 + $0x164] sm:$0xf]  ;;  %v3782_v1 = vld [vmem:[#allocation6 + $0x108] sm:$0xf0] }
 0x125   :  { %2476 = vmatpush.bf16.msra.mxu0 %v3685_v34  ;;  %v1849_v17 = vpop.f32.mrf.mxu2  ;;  %v4174_v34 = vld [vmem:[#allocation6 + $0x64] sm:$0xf]  ;;  %v3745_v10 = vor.u32 %v4184_v26, %v3742_v31 }
 0x126   :  { %2489 = vmatpush.bf16.msra.mxu1 %v3749_v36  ;;  %v1862_v21 = vpop.f32.mrf.mxu3  ;;  %v4455_v36 = vpack.c.bf16 %v2077_v11, %v2077_v11  ;;  %v3705_v50 = vor.u32 %v4174_v34, %v3702_v41  ;;  %v3814_v34 = vld [vmem:[#allocation6 + $0x148] sm:$0xf0]  ;;  %v3729_v41 = vor.u32 %v4180_v28, %v3726_v29 }
 0x127   :  { %v3737_v21 = vor.u32 %v4182_v15, %v3734_v16 }
 0x128   :  { %2502 = vmatpush.bf16.msra.mxu2 %v3813_v6 }
 0x129   :  { %2477 = vmatpush.bf16.msra.mxu0 %v3677_v51  ;;  %v3694_v51 = vld [vmem:[#allocation6 + $0x58] sm:$0xf0] }
 0x12a   :  { %2490 = vmatpush.bf16.msra.mxu1 %v3741_v54  ;;  %v3789_v54 = vor.u32 %v4197_v48, %v3788_v47  ;;  %v3697_v57 = vor.u32 %v4172_v35, %v3694_v51  ;;  %v4200_v48 = vld [vmem:[#allocation6 + $0x134] sm:$0xf]  ;;  %v3657_v51 = vor.u32 %v4162_v42, %v3654_v43 }
 0x12b   :  { %v4224_v43 = vld [vmem:[#allocation6 + $0x1f4] sm:$0xf] }
 0x12c   :  { %2503 = vmatpush.bf16.msra.mxu2 %v3805_v24 }
 0x12d   :  { %2478 = vmatpush.bf16.msra.mxu0 %v3669_v63  ;;  %v3781_v63 = vor.u32 %v4195_v56, %v3780_v55  ;;  %v3900_v56 = vld [vmem:[#allocation6 + $0x1f0] sm:$0xf] }
 0x12e   :  { %2491 = vmatpush.bf16.msra.mxu1 %v3733_v3  ;;  %v4168_v3 = vld [vmem:[#allocation6 + $0x34] sm:$0xf] }
 0x12f   :  { %v3681_v7 = vor.u32 %v4168_v3, %v3678_v4 }
 0x130   :  { %2504 = vmatpush.bf16.msra.mxu2 %v3797_v46 }
 0x131   :  { %2479 = vmatpush.bf16.msra.mxu0 %v3661_v9  ;;  %v3830_v9 = vld [vmem:[#allocation6 + $0x168] sm:$0xf0] }
 0x132   :  { %2492 = vmatpush.bf16.msra.mxu1 %v3725_v13  ;;  %v3670_v13 = vld [vmem:[#allocation6 + $0x28] sm:$0xf0]  ;;  %v3833_v14 = vor.u32 %v4206_v8, %v3830_v9  ;;  %v4221_v8 = vld [vmem:[#allocation6 + $0x1d4] sm:$0xf0] }
 0x133   :  { %v3673_v18 = vor.u32 %v4166_v12, %v3670_v13  ;;  %v3876_v13 = vld [vmem:[#allocation6 + $0x1c0] sm:$0xf] }
 0x134   :  { %2505 = vmatpush.bf16.msra.mxu2 %v3789_v54  ;;  %v3798_v54 = vld [vmem:[#allocation6 + $0x128] sm:$0xf0] }
 0x135   :  { %2480 = vmatpush.bf16.msra.mxu0 %v3653_v27  ;;  %v1873_v5 = vpop.f32.mrf.mxu0  ;;  %v3825_v27 = vor.u32 %v4204_v19, %v3822_v20 }
 0x136   :  { %2493 = vmatpush.bf16.msra.mxu1 %v3717_v39  ;;  %v1886_v32 = vpop.f32.mrf.mxu1  ;;  %v3665_v39 = vor.u32 %v4164_v22, %v3662_v23  ;;  %v3860_v23 = vld [vmem:[#allocation6 + $0x1a0] sm:$0xf] }
 0x138   :  { %2481 = vmatmul.bf16.vlgmr.msra.gmra.mxu0 %v4457_v40  ;;  %2506 = vmatpush.bf16.msra.mxu2 %v3781_v63  ;;  %v3793_v63 = vor.u32 %v4196_v61, %v3790_v62  ;;  %v4216_v62 = vld [vmem:[#allocation6 + $0x1b4] sm:$0xf] }
 0x139   :  { %2525 = vmatpush.bf16.msrb.mxu0 %v3713_v37  ;;  %2494 = vmatmul.bf16.vlgmr.msra.gmra.mxu1 %v4455_v36  ;;  %v4461_v37 = vld [vmem:[#allocation7] sm:$0xf] }
 0x13a   :  { %2538 = vmatpush.bf16.msrb.mxu1 %v3777_v38  ;;  %v370_v24 = vperm.slane %v4461_v37, 2  ;;  %v4202_v38 = vld [vmem:[#allocation6 + $0x144] sm:$0xf] }
 0x13b   :  { %v3817_v44 = vor.u32 %v4202_v38, %v3814_v34  ;;  %v3844_v34 = vld [vmem:[#allocation6 + $0x180] sm:$0xf] }
 0x13c   :  { %2551 = vmatpush.bf16.msrb.mxu2 %v3841_v30  ;;  %v1874_v35 = vadd.f32 %v1873_v5, %v370_v24  ;;  %v3892_v5 = vld [vmem:[#allocation6 + $0x1e0] sm:$0xf]  ;;  %v4223_v30 = vld [vmem:[#allocation6 + $0x1e4] sm:$0xf0]  ;;  %v4213_v24 = vld [vmem:[#allocation6 + $0x194] sm:$0xf0] }
 0x13d   :  { %2526 = vmatpush.bf16.msrb.mxu0 %v3705_v50  ;;  %v1899_v17 = vpop.f32.mrf.mxu2  ;;  %v1875_v11 = vpop.f32.mrf.mxu0  ;;  %v3718_v50 = vld [vmem:[#allocation6 + $0x88] sm:$0xf0] }
 0x13e   :  { %2539 = vmatpush.bf16.msrb.mxu1 %v3769_v49  ;;  %v1912_v6 = vpop.f32.mrf.mxu3  ;;  %v1888_v33 = vpop.f32.mrf.mxu1  ;;  %v3806_v49 = vld [vmem:[#allocation6 + $0x138] sm:$0xf0]  ;;  %v3721_v55 = vor.u32 %v4178_v45, %v3718_v50  ;;  %v1887_v60 = vadd.f32 %v1886_v32, %v1874_v35  ;;  %v3893_v32 = vor.u32 %v4223_v30, %v3892_v5  ;;  %v4215_v11 = vld [vmem:[#allocation6 + $0x1a4] sm:$0xf0]  ;;  %v4212_v5 = vld [vmem:[#allocation6 + $0x194] sm:$0xf] }
 0x13f   :  { %v3809_v52 = vor.u32 %v4200_v48, %v3806_v49  ;;  %v3861_v33 = vor.u32 %v4215_v11, %v3860_v23  ;;  %v3894_v48 = vld [vmem:[#allocation6 + $0x1e8] sm:$0xf0]  ;;  %v3854_v30 = vld [vmem:[#allocation6 + $0x198] sm:$0xf0]  ;;  %v108_v23 = vld [vmem:[#allocation7 + $0x4] sm:$0x3] }
 0x140   :  { %2552 = vmatpush.bf16.msrb.mxu2 %v3833_v14  ;;  %v4219_v14 = vld [vmem:[#allocation6 + $0x1c4] sm:$0xf0]  ;;  %v2149_v11 = vperm.slane %v108_v23, 0 }
 0x141   :  { %2527 = vmatpush.bf16.msrb.mxu0 %v3697_v57  ;;  %v4225_v57 = vld [vmem:[#allocation6 + $0x1f4] sm:$0xf0]  ;;  %v3877_v15 = vor.u32 %v4219_v14, %v3876_v13 }
 0x142   :  { %2540 = vmatpush.bf16.msrb.mxu1 %v3761_v58  ;;  %v3801_v58 = vor.u32 %v4198_v53, %v3798_v54  ;;  %v3901_v59 = vor.u32 %v4225_v57, %v3900_v56  ;;  %v4218_v57 = vld [vmem:[#allocation6 + $0x1c4] sm:$0xf] }
 0x144   :  { %2553 = vmatpush.bf16.msrb.mxu2 %v3825_v27  ;;  %2512 = vmatpush.bf16.msra.mxu3 %v3901_v59 }
 0x145   :  { %2528 = vmatpush.bf16.msrb.mxu0 %v3689_v0  ;;  %v1901_v46 = vpop.f32.mrf.mxu2  ;;  %v1900_v0 = vadd.f32 %v1899_v17, %v1887_v60  ;;  %v371_v60 = vperm.slane %v4461_v37, 3  ;;  %v3846_v37 = vld [vmem:[#allocation6 + $0x188] sm:$0xf0] }
 0x146   :  { %2541 = vmatpush.bf16.msrb.mxu1 %v3753_v2  ;;  %v1914_v47 = vpop.f32.mrf.mxu3  ;;  %v3785_v2 = vor.u32 %v4194_v25, %v3782_v1  ;;  %v4214_v1 = vld [vmem:[#allocation6 + $0x1a4] sm:$0xf] }
 0x147   :  { %v1913_v3 = vadd.f32 %v1912_v6, %v1900_v0  ;;  %v3868_v6 = vld [vmem:[#allocation6 + $0x1b0] sm:$0xf]  ;;  %v4222_v47 = vld [vmem:[#allocation6 + $0x1e4] sm:$0xf] }
 0x148   :  { %2554 = vmatpush.bf16.msrb.mxu2 %v3817_v44  ;;  %2513 = vmatpush.bf16.msra.mxu3 %v3893_v32  ;;  %v3902_v44 = vld [vmem:[#allocation6 + $0x1f8] sm:$0xf0]  ;;  %v3897_v49 = vor.u32 %v4222_v47, %v3894_v48 }
 0x149   :  { %2529 = vmatpush.bf16.msrb.mxu0 %v3681_v7  ;;  %v3884_v7 = vld [vmem:[#allocation6 + $0x1d0] sm:$0xf]  ;;  %v3905_v45 = vor.u32 %v4224_v43, %v3902_v44 }
 0x14a   :  { %2542 = vmatpush.bf16.msrb.mxu1 %v3745_v10  ;;  %v3885_v9 = vor.u32 %v4221_v8, %v3884_v7  ;;  %v4210_v7 = vld [vmem:[#allocation6 + $0x184] sm:$0xf] }
 0x14b   :  { %v3849_v8 = vor.u32 %v4210_v7, %v3846_v37 }
 0x14c   :  { %2555 = vmatpush.bf16.msrb.mxu2 %v3809_v52  ;;  %2514 = vmatpush.bf16.msra.mxu3 %v3885_v9  ;;  %v3886_v52 = vld [vmem:[#allocation6 + $0x1d8] sm:$0xf0] }
 0x14d   :  { %2530 = vmatpush.bf16.msrb.mxu0 %v3673_v18  ;;  %v4217_v18 = vld [vmem:[#allocation6 + $0x1b4] sm:$0xf0] }
 0x14e   :  { %2543 = vmatpush.bf16.msrb.mxu1 %v3737_v21  ;;  %v3869_v21 = vor.u32 %v4217_v18, %v3868_v6 }
 0x150   :  { %2556 = vmatpush.bf16.msrb.mxu2 %v3801_v58  ;;  %2515 = vmatpush.bf16.msra.mxu3 %v3877_v15  ;;  %v3878_v58 = vld [vmem:[#allocation6 + $0x1c8] sm:$0xf0] }
 0x151   :  { %2531 = vmatpush.bf16.msrb.mxu0 %v3665_v39  ;;  %v3852_v39 = vld [vmem:[#allocation6 + $0x190] sm:$0xf]  ;;  %v3881_v59 = vor.u32 %v4218_v57, %v3878_v58 }
 0x152   :  { %2544 = vmatpush.bf16.msrb.mxu1 %v3729_v41  ;;  %v3853_v38 = vor.u32 %v4213_v24, %v3852_v39  ;;  %v4211_v41 = vld [vmem:[#allocation6 + $0x184] sm:$0xf0] }
 0x153   :  { %v3845_v42 = vor.u32 %v4211_v41, %v3844_v34 }
 0x154   :  { %2557 = vmatpush.bf16.msrb.mxu2 %v3793_v63  ;;  %2516 = vmatpush.bf16.msra.mxu3 %v3869_v21  ;;  %v3870_v63 = vld [vmem:[#allocation6 + $0x1b8] sm:$0xf0] }
 0x155   :  { %2532 = vmatpush.bf16.msrb.mxu0 %v3657_v51  ;;  %v1925_v4 = vpop.f32.mrf.mxu0  ;;  %v4220_v51 = vld [vmem:[#allocation6 + $0x1d4] sm:$0xf]  ;;  %v3873_v25 = vor.u32 %v4216_v62, %v3870_v63 }
 0x156   :  { %2545 = vmatpush.bf16.msrb.mxu1 %v3721_v55  ;;  %v1926_v26 = vadd.f32 %v1925_v4, %v1913_v3  ;;  %v1938_v31 = vpop.f32.mrf.mxu1  ;;  %v3889_v54 = vor.u32 %v4220_v51, %v3886_v52 }
 0x158   :  { %2533 = vmatmul.bf16.vlgmr.msrb.gmra.mxu0 %v4457_v40  ;;  %2558 = vmatpush.bf16.msrb.mxu2 %v3785_v2  ;;  %v1939_v40 = vadd.f32 %v1938_v31, %v1926_v26  ;;  %v3862_v2 = vld [vmem:[#allocation6 + $0x1a8] sm:$0xf0]  ;;  %v3857_v31 = vor.u32 %v4212_v5, %v3854_v30 }
 0x159   :  { %2546 = vmatmul.bf16.vlgmr.msrb.gmra.mxu1 %v4455_v36  ;;  %2517 = vmatpush.bf16.msra.mxu3 %v3861_v33  ;;  %v3865_v4 = vor.u32 %v4214_v1, %v3862_v2 }
 0x15d   :  { %v1951_v10 = vpop.f32.mrf.mxu2  ;;  %v1927_v17 = vpop.f32.mrf.mxu0  ;;  %2518 = vmatpush.bf16.msra.mxu3 %v3853_v38  ;;  %v2150_v38 = vperm.slane %v108_v23, 1 }
 0x15e   :  { %v1952_v12 = vadd.f32 %v1951_v10, %v1939_v40  ;;  %v1964_v36 = vpop.f32.mrf.mxu3  ;;  %v1940_v19 = vpop.f32.mrf.mxu1 }
 0x160   :  { %v1965_v16 = vadd.f32 %v1964_v36, %v1952_v12 }
 0x161   :  { %2519 = vmatpush.bf16.msra.mxu3 %v3845_v42 }
 0x162   :  { %v2074_v20 = vmul.f32 0.2, %v1965_v16 }
 0x164   :  { %v2078_v22 = vmax.f32 %v1965_v16, %v2074_v20 }
 0x165   :  { %v1953_v27 = vpop.f32.mrf.mxu2  ;;  %2564 = vmatpush.bf16.msrb.mxu3 %v3905_v45 }
 0x166   :  { %v2082_v28 = vpack.c.bf16 %v2078_v22, %v2078_v22  ;;  %v1966_v29 = vpop.f32.mrf.mxu3 }
 0x168   :  { %2507 = vmatmul.bf16.vlgmr.msra.gmra.mxu2 %v2082_v28 }
 0x169   :  { %2565 = vmatpush.bf16.msrb.mxu3 %v3897_v49 }
 0x16d   :  { %2566 = vmatpush.bf16.msrb.mxu3 %v3889_v54  ;;  %v109_v54 = vld [vmem:[#allocation7 + $0x6] sm:$0x3] }
 0x171   :  { %2567 = vmatpush.bf16.msrb.mxu3 %v3881_v59  ;;  %v2582_v59 = vperm.slane %v109_v54, 0 }
 0x175   :  { %v1977_v50 = vpop.f32.mrf.mxu0  ;;  %2568 = vmatpush.bf16.msrb.mxu3 %v3873_v25 }
 0x176   :  { %v1990_v46 = vpop.f32.mrf.mxu1  ;;  %v1978_v3 = vadd.f32 %v1977_v50, %v371_v60 }
 0x178   :  { %2559 = vmatmul.bf16.vlgmr.msrb.gmra.mxu2 %v2082_v28  ;;  %v1991_v26 = vadd.f32 %v1990_v46, %v1978_v3 }
 0x179   :  { %2569 = vmatpush.bf16.msrb.mxu3 %v3865_v4  ;;  %v4234_v4 = vld [vmem:[#allocation7 + $0x8] ss:$0 sm:$0xff] }
 0x17d   :  { %v2003_v35 = vpop.f32.mrf.mxu2  ;;  %v1979_v55 = vpop.f32.mrf.mxu0  ;;  %2570 = vmatpush.bf16.msrb.mxu3 %v3857_v31 }
 0x17e   :  { %v2016_v53 = vpop.f32.mrf.mxu3  ;;  %v1992_v56 = vpop.f32.mrf.mxu1  ;;  %v2004_v32 = vadd.f32 %v2003_v35, %v1991_v26 }
 0x180   :  { %v2017_v40 = vadd.f32 %v2016_v53, %v2004_v32 }
 0x181   :  { %2571 = vmatpush.bf16.msrb.mxu3 %v3849_v8 }
 0x185   :  { %v2005_v61 = vpop.f32.mrf.mxu2 }
 0x186   :  { %v2018_v0 = vpop.f32.mrf.mxu3  ;;  %v2583_v61 = vperm.slane %v109_v54, 1 }
 0x195   :  { %v2029_v9 = vpop.f32.mrf.mxu0 }
 0x196   :  { %v2042_v10 = vpop.f32.mrf.mxu1  ;;  %v2030_v12 = vadd.f32 %v2029_v9, %v2017_v40 }
 0x198   :  { %v2043_v36 = vadd.f32 %v2042_v10, %v2030_v12 }
 0x19d   :  { %v2055_v13 = vpop.f32.mrf.mxu2  ;;  %v2031_v16 = vpop.f32.mrf.mxu0 }
 0x19e   :  { %v2056_v14 = vadd.f32 %v2055_v13, %v2043_v36  ;;  %v2068_v15 = vpop.f32.mrf.mxu3  ;;  %v2044_v17 = vpop.f32.mrf.mxu1 }
 0x1a0   :  { %v2069_v6 = vadd.f32 %v2068_v15, %v2056_v14 }
 0x1a2   :  { %v2075_v18 = vmul.f32 0.2, %v2069_v6 }
 0x1a4   :  { %v2079_v19 = vmax.f32 %v2069_v6, %v2075_v18 }
 0x1a5   :  { %v2057_v20 = vpop.f32.mrf.mxu2 }
 0x1a6   :  { %v2083_v21 = vpack.c.bf16 %v2079_v19, %v2079_v19  ;;  %v2070_v22 = vpop.f32.mrf.mxu3 }
 0x1a8   :  { %2520 = vmatmul.bf16.vlgmr.msra.gmra.mxu3 %v2083_v21 }
 0x1b5   :  { %v2482_v27 = vpop.f32.mrf.mxu0 }
 0x1b6   :  { %v2483_v28 = vadd.f32 %v2482_v27, %v2149_v11  ;;  %v2495_v29 = vpop.f32.mrf.mxu1 }
 0x1b8   :  { %v2496_v33 = vadd.f32 %v2495_v29, %v2483_v28  ;;  %2572 = vmatmul.bf16.vlgmr.msrb.gmra.mxu3 %v2083_v21 }
 0x1bd   :  { %v2484_v39 = vpop.f32.mrf.mxu0 }
 0x1be   :  { %v2497_v24 = vpop.f32.mrf.mxu1 }
 0x1d5   :  { %v2534_v34 = vpop.f32.mrf.mxu0 }
 0x1d6   :  { %v2535_v41 = vadd.f32 %v2534_v34, %v2150_v38  ;;  %v2547_v42 = vpop.f32.mrf.mxu1 }
 0x1d8   :  { %v2548_v43 = vadd.f32 %v2547_v42, %v2535_v41 }
 0x1dd   :  { %v2536_v44 = vpop.f32.mrf.mxu0 }
 0x1de   :  { %v2549_v45 = vpop.f32.mrf.mxu1 }
 0x1eb   :  { %v2508_v50 = vpop.f32.mrf.mxu2 }
 0x1ec   :  { %v2509_v46 = vadd.f32 %v2508_v50, %v2496_v33 }
 0x1f3   :  { %v2510_v47 = vpop.f32.mrf.mxu2 }
 0x1fb   :  { %v2560_v48 = vpop.f32.mrf.mxu2 }
 0x1fc   :  { %v2561_v55 = vadd.f32 %v2560_v48, %v2548_v43 }
 0x203   :  { %v2562_v49 = vpop.f32.mrf.mxu2 }
 0x22b   :  { %v2521_v35 = vpop.f32.mrf.mxu3 }
 0x22c   :  { %v2522_v52 = vadd.f32 %v2521_v35, %v2509_v46 }
 0x22e   :  { %v2577_v53 = vmul.f32 0.2, %v2522_v52 }
 0x230   :  { %v2579_v57 = vmax.f32 %v2522_v52, %v2577_v53 }
 0x232   :  { %v2586_v63 = vmul.f32 %v2582_v59, %v2579_v57 }
 0x233   :  { %v2523_v51 = vpop.f32.mrf.mxu3 }
 0x234   :  { %v2589_v1 = vsel %vm2588_vm0, %v2586_v63, 0.0 }
 0x23b   :  { %v2573_v56 = vpop.f32.mrf.mxu3 }
 0x23c   :  { %v2574_v58 = vadd.f32 %v2573_v56, %v2561_v55 }
 0x23e   :  { %v2578_v60 = vmul.f32 0.2, %v2574_v58 }
 0x240   :  { %v2580_v62 = vmax.f32 %v2574_v58, %v2578_v60 }
 0x242   :  { %v2587_v0 = vmul.f32 %v2583_v61, %v2580_v62 }
 0x243   :  { %v2575_v25 = vpop.f32.mrf.mxu3 }
 0x244   :  { %v2590_v2 = vsel %vm2588_vm0, %v2587_v0, 0.0 }
 0x245   :  { %v2591_v3 = vadd.f32 %v2590_v2, %v2589_v1 }
 0x247   :  { %2592 = vadd.xlane.f32.xlu0 %v2591_v3 }
 0x2ba   :  { %v2593_v5 = vpop.xlane.xlu0 %2592 }
 0x2bb   :  { %v2597_v30 = vadd.f32 %v4234_v4, %v2593_v5 }
 0x2bd   :  { %v2598_v26 = vsub.f32 0.0, %v2597_v30 }
 0x2bf   :  { %v2599_v31 = vmul.f32 1.442695, %v2598_v26 }
 0x2c1   :  { %4235 = vpow2.f32 %v2599_v31 }
 0x2c7   :  { %v4236_v32 = vpop.eup %4235 }
 0x2c8   :  { %v2601_v7 = vadd.f32 1.0, %v4236_v32 }
 0x2ca   :  { %4237 = vrcp.f32 %v2601_v7  ;;  %v2613_v9 = vand.u32 2147483648, %v2601_v7  ;;  %v2611_v12 = vand.u32 2147483647, %v2601_v7  ;;  %vm2607_vm2 = vweird.f32 %v2601_v7 }
 0x2cc   :  { %v2614_v13 = vor.u32 1.1754944e-38, %v2613_v9  ;;  %vm2612_vm5 = vcmp.eq.f32.partialorder %v2611_v12, 8.507059e+37 }
 0x2d0   :  { %v4238_v37 = vpop.eup %4237 }
 0x2d1   :  { %v2603_v8 = vmul.f32 %v4238_v37, %v2601_v7  ;;  %vm2608_vm1 = vweird.f32 %v4238_v37 }
 0x2d2   :  { %vm2609_vm3 = vmor %vm2607_vm2, %vm2608_vm1 }
 0x2d3   :  { %v2604_v40 = vsub.f32 1.0, %v2603_v8 }
 0x2d5   :  { %v2605_v10 = vmul.f32 %v4238_v37, %v2604_v40 }
 0x2d7   :  { %v2606_v36 = vadd.f32 %v4238_v37, %v2605_v10 }
 0x2d9   :  { %v2610_v14 = vsel %vm2609_vm3, %v4238_v37, %v2606_v36 }
 0x2da   :  { %v2615_v15 = vsel %vm2612_vm5, %v2614_v13, %v2610_v14 }
 0x2db   :  { %2618 = vst.msk [vmem:[%s4474_s4] sm:$0x3] %vm2617_vm4, %v2615_v15 }
 0x2dc   :  { %2623 = vsyncpa [#allocation3], 1 }
 0x2dd   :  { %2624 = vsyncpa [#allocation5], 1 }
 0x2de   :  { %2625 = vsyncpa [#allocation8], 1 }

</bundles_post_ra>
